<compile_context>
chip_gen: v7x
topology: tpu7x:2x2x1
jax: 0.10.0
libtpu: 0.0.40
codegen_flags: <defaults>
</compile_context>

<pallas_src>
import functools
import numpy as np
import jax
import jax.numpy as jnp
from jax import lax
from jax.experimental import pallas as pl
from jax.experimental.pallas import tpu as pltpu


# ---------------------------------------------------------------- pallas glue
def _full_spec(shape):
    nd = len(shape)
    return pl.BlockSpec(shape, lambda i, _nd=nd: (0,) * _nd)


def _round8(r):
    return -(-r // 8) * 8


# ---------------------------------------------------------------- model setup
def _imdims(input_im_size, layers):
    scale = (input_im_size / 4) ** (-1.0 / (layers - 1))
    return ([input_im_size]
            + [int(input_im_size * scale ** k) for k in range(1, layers - 1)]
            + [4])


def init_image_critic_params(key, input_im_size, layers, channels):
    """Parameters matching ImageCritic(input_im_size, layers, channels).

    conv{i}_w : (3, 3, cin, cout) HWIO       conv{i}_b : (1, cout)
    bn{i}_gamma / bn{i}_beta : (1, c)        (BatchNorm before convs 2..layers-1)
    lin_w : (4*4*channels[-1], 1)            lin_b : (1, 1)
    """
    assert len(channels) == layers + 1
    del input_im_size
    n_keys = 2 * layers + 2 * max(layers - 2, 0) + 2
    keys = iter(jax.random.split(key, n_keys))
    params = {}
    for i in range(1, layers + 1):
        cin, cout = channels[i - 1], channels[i]
        params[f"conv{i}_w"] = 0.1 * jax.random.normal(next(keys), (3, 3, cin, cout), jnp.float32)
        params[f"conv{i}_b"] = 0.1 * jax.random.normal(next(keys), (1, cout), jnp.float32)
    for i in range(2, layers):  # BatchNorm before intermediate conv i (i != 1)
        c = channels[i - 1]
        params[f"bn{i}_gamma"] = 1.0 + 0.1 * jax.random.normal(next(keys), (1, c), jnp.float32)
        params[f"bn{i}_beta"] = 0.1 * jax.random.normal(next(keys), (1, c), jnp.float32)
    feat = 4 * 4 * channels[-1]
    params["lin_w"] = 0.1 * jax.random.normal(next(keys), (feat, 1), jnp.float32)
    params["lin_b"] = 0.1 * jax.random.normal(next(keys), (1, 1), jnp.float32)
    return params


# --------------------------------------------- host-side structural constants
@functools.lru_cache(maxsize=None)
def _lerp_table(n_out, n_in):
    """2-tap lerp table matching nn.Upsample(mode='bilinear', align_corners=True)."""
    i0, i1, f = [], [], []
    for i in range(n_out):
        src = i * (n_in - 1) / (n_out - 1) if n_out > 1 else 0.0
        a = int(np.floor(src))
        b = min(a + 1, n_in - 1)
        i0.append(a)
        i1.append(b)
        f.append(float(src - a))
    return tuple(i0), tuple(i1), tuple(f)


def _interior_mask(batch, d, with_margin):
    """1.0 at interior pixels of the flat padded layout, 0.0 at pads (and margins)."""
    wp = d + 2
    mp = batch * wp * wp
    m0 = wp + 1
    m = np.zeros(mp, np.float32)
    for n in range(batch):
        for h in range(d):
            base = (n * wp + h + 1) * wp + 1
            m[base:base + d] = 1.0
    if with_margin:
        m = np.concatenate([np.zeros(m0, np.float32), m, np.zeros(m0, np.float32)])
    return m


def _resize_matrix(batch, d_in, d_out):
    """(Mp_in, Mext_out) map: bilinear align_corners=True resize of the conv output
    (flat padded, no margins) into the NEXT layer's margin-extended flat layout.
    Zero columns at the output pads/margins keep them exactly zero; only interior
    input rows carry weight, so garbage at the conv-output pad positions is ignored."""
    wpi, wpo = d_in + 2, d_out + 2
    mpi = batch * wpi * wpi
    m0o = wpo + 1
    mexto = batch * wpo * wpo + 2 * m0o
    R = np.zeros((mpi, mexto), np.float32)
    i0, i1, f = _lerp_table(d_out, d_in)
    for n in range(batch):
        for ho in range(d_out):
            for wo in range(d_out):
                mo = m0o + (n * wpo + ho + 1) * wpo + (wo + 1)
                for hs, wh in ((i0[ho], 1.0 - f[ho]), (i1[ho], f[ho])):
                    for ws, ww in ((i0[wo], 1.0 - f[wo]), (i1[wo], f[wo])):
                        w = wh * ww
                        if w == 0.0:
                            continue
                        mi = (n * wpi + hs + 1) * wpi + (ws + 1)
                        R[mi, mo] += w
    return R


# ------------------------------------------------------------- plan & packing
def _build_plan(input_im_size, layers, channels, batch):
    """Static layout plan: per-layer flat-padded sizes + row offsets into the single
    packed parameter/constant buffer (all blocks 8-row aligned, column 0 aligned)."""
    channels = tuple(channels)
    dims = _imdims(input_im_size, layers)          # len == layers
    lay = []
    for i in range(1, layers + 1):
        d = dims[i - 1]
        wp = d + 2
        mp = batch * wp * wp
        m0 = wp + 1
        lay.append(dict(d=d, wp=wp, mp=mp, m0=m0, mext=mp + 2 * m0,
                        has_resize=(i < layers and dims[i - 1] != dims[i])))

    cur = 0
    cols = 0

    def alloc(rows):
        nonlocal cur
        off = cur
        cur += _round8(rows)
        return off

    for i in range(1, layers + 1):
        li = lay[i - 1]
        cin, cout = channels[i - 1], channels[i]
        li["w_off"] = alloc(cout)                   # (cout, 9*cin) weights + bias column
        cols = max(cols, 9 * cin + 1)
        if 2 <= i <= layers - 1:
            li["bn_off"] = alloc(cin)               # (cin, 2): gamma | beta
            cols = max(cols, 2)
            li["bnmask_off"] = alloc(1)             # (1, mext): interior mask (with margins)
            cols = max(cols, li["mext"])
        if i < layers:
            if li["has_resize"]:
                li["r_off"] = alloc(li["mp"])       # (mp_in, mext_next) resize+repad map
                cols = max(cols, lay[i]["mext"])
            else:
                li["imask_off"] = alloc(1)          # (1, mp): interior mask (no margins)
                cols = max(cols, li["mp"])
    last = lay[-1]
    v_off = alloc(channels[-1])                     # (c_last, mp_last) head map + lin_b col
    cols = max(cols, last["mp"] + 1)
    sel_off = alloc(batch)                          # (batch, mp_last) per-image selector
    cols = max(cols, last["mp"])
    return dict(dims=dims, layers=layers, channels=channels, batch=batch,
                lay=lay, v_off=v_off, sel_off=sel_off, rows=cur, cols=cols)


def pack_image_critic_inputs(params, input_im_size, layers, channels, batch):
    """Host-side, ONCE (not in the per-call forward path): pack every conv weight,
    bias, BN param, interior mask, resize map and the linear head into ONE
    contiguous f32 buffer, so the kernel prologue is a single DMA."""
    channels = tuple(channels)
    plan = _build_plan(input_im_size, layers, channels, batch)
    dims = plan["dims"]
    buf = np.zeros((plan["rows"], plan["cols"]), np.float32)

    for i in range(1, layers + 1):
        li = plan["lay"][i - 1]
        cin, cout = channels[i - 1], channels[i]
        w = np.asarray(params[f"conv{i}_w"], np.float32)             # (3,3,cin,cout) HWIO
        w_pack = np.transpose(w, (3, 0, 1, 2)).reshape(cout, 9 * cin)  # (cout, tap*cin)
        buf[li["w_off"]:li["w_off"] + cout, :9 * cin] = w_pack
        buf[li["w_off"]:li["w_off"] + cout, 9 * cin] = \
            np.asarray(params[f"conv{i}_b"], np.float32).reshape(cout)
        if 2 <= i <= layers - 1:
            buf[li["bn_off"]:li["bn_off"] + cin, 0] = \
                np.asarray(params[f"bn{i}_gamma"], np.float32).reshape(cin)
            buf[li["bn_off"]:li["bn_off"] + cin, 1] = \
                np.asarray(params[f"bn{i}_beta"], np.float32).reshape(cin)
            buf[li["bnmask_off"], :li["mext"]] = _interior_mask(batch, li["d"], True)
        if i < layers:
            if li["has_resize"]:
                buf[li["r_off"]:li["r_off"] + li["mp"], :plan["lay"][i]["mext"]] = \
                    _resize_matrix(batch, dims[i - 1], dims[i])
            else:
                buf[li["imask_off"], :li["mp"]] = _interior_mask(batch, li["d"], False)

    # Head: linear weight laid out over the final flat-padded map, zero at pads,
    # tiled over images; PyTorch flattens (C, 4, 4) in (c, h, w) order.
    last = plan["lay"][-1]
    c_last, d_last, wpl = channels[-1], dims[-1], last["wp"]
    lin_w = np.asarray(params["lin_w"], np.float32).reshape(c_last, d_last, d_last)
    V = np.zeros((c_last, last["mp"]), np.float32)
    for n in range(batch):
        for h in range(d_last):
            for w_ in range(d_last):
                V[:, (n * wpl + h + 1) * wpl + (w_ + 1)] = lin_w[:, h, w_]
    buf[plan["v_off"]:plan["v_off"] + c_last, :last["mp"]] = V
    buf[plan["v_off"], last["mp"]] = float(np.asarray(params["lin_b"]).reshape(()))
    s_img = wpl * wpl
    for n in range(batch):
        buf[plan["sel_off"] + n, n * s_img:(n + 1) * s_img] = 1.0
    return jnp.asarray(buf)


# ---------------------------------------------------------------- fused kernel
def _make_kernel(plan):
    layers = plan["layers"]
    channels = plan["channels"]
    batch = plan["batch"]

    def kernel(x_ref, p_ref, o_ref):
        # (C0, Mext_1) flat-padded activation; pads/margins are exactly zero.
        x = x_ref[...]
        for i in range(1, layers + 1):
            li = plan["lay"][i - 1]
            cin, cout = channels[i - 1], channels[i]
            m0, wp, mp = li["m0"], li["wp"], li["mp"]

            # --- BatchNorm2d (train-mode batch stats, eps=1e-5), one-pass sum/sumsq.
            #     The shift is masked to interior lanes so pads/margins stay zero
            #     (conv zero-padding happens AFTER BN in the reference).
            if 2 <= i <= layers - 1:
                bn = p_ref[li["bn_off"]:li["bn_off"] + cin, 0:2]
                gamma, beta = bn[:, 0:1], bn[:, 1:2]
                mask = p_ref[li["bnmask_off"]:li["bnmask_off"] + 1, 0:li["mext"]]
                inv_cnt = 1.0 / float(batch * li["d"] * li["d"])
                mean = jnp.sum(x, axis=1, keepdims=True) * inv_cnt
                ex2 = jnp.sum(x * x, axis=1, keepdims=True) * inv_cnt
                var = ex2 - mean * mean
                scale = gamma * lax.rsqrt(var + 1e-5)
                x = x * scale + (beta - mean * scale) * mask

            # --- 3x3 conv (padding=1) as ONE lane-dense MXU matmul:
            #     (cout, 9*cin) x (9*cin, N*Hp*Wp).  Taps are static lane-shifted
            #     slices of the margin-extended flat activation, stacked along K.
            w = p_ref[li["w_off"]:li["w_off"] + cout, 0:9 * cin]
            b = p_ref[li["w_off"]:li["w_off"] + cout, 9 * cin:9 * cin + 1]
            cols = jnp.concatenate(
                [x[:, m0 + (ky - 1) * wp + (kx - 1): m0 + (ky - 1) * wp + (kx - 1) + mp]
                 for ky in range(3) for kx in range(3)], axis=0)
            y = jnp.dot(w, cols, preferred_element_type=jnp.float32) + b   # (cout, mp)

            if i < layers:
                nxt = plan["lay"][i]
                if li["has_resize"]:
                    # Bilinear (align_corners=True) resize + re-pad for the next layer
                    # as ONE matmul; zero map columns keep the new pads/margins zero.
                    r = p_ref[li["r_off"]:li["r_off"] + mp, 0:nxt["mext"]]
                    x = jnp.maximum(jnp.dot(y, r, preferred_element_type=jnp.float32), 0.0)
                else:
                    # Same-size layer (not hit in the demo config): zero the pads and
                    # re-add the margins for the next layer's taps.
                    im = p_ref[li["imask_off"]:li["imask_off"] + 1, 0:mp]
                    y = jnp.maximum(y, 0.0) * im
                    z = jnp.zeros((cout, nxt["m0"]), jnp.float32)
                    x = jnp.concatenate([z, y, z], axis=1)
            else:
                # --- linear head over the PyTorch-order flattened (C, 4, 4) features.
                #     The head map is zero at pad positions, so the conv-output pad
                #     garbage never contributes.
                v = p_ref[plan["v_off"]:plan["v_off"] + cout, 0:mp]
                lin_b = p_ref[plan["v_off"]:plan["v_off"] + 1, mp:mp + 1]
                zrow = jnp.sum(y * v, axis=0, keepdims=True)            # (1, mp_last)
                q = p_ref[plan["sel_off"]:plan["sel_off"] + batch, 0:mp] * zrow
                o_ref[...] = jnp.sum(q, axis=1, keepdims=True) + lin_b  # (batch, 1)

    return kernel


# -------------------------------------------------------------------- forward
def image_critic_forward(image_nchw, packed, input_im_size, layers, channels):
    channels = tuple(channels)
    batch = int(image_nchw.shape[0])
    plan = _build_plan(input_im_size, layers, channels, batch)
    assert packed.shape == (plan["rows"], plan["cols"]), \
        "packed buffer was built for a different config / batch size"

    # Only per-call host work: rearrange the NCHW input into the kernel's
    # lane-dense flat-padded (C0, N*Hp*Wp + margins) layout (tiny tensor).
    l1 = plan["lay"][0]
    c0 = channels[0]
    x = jnp.transpose(image_nchw.astype(jnp.float32), (1, 0, 2, 3))     # (C0, N, H, W)
    x = jnp.pad(x, ((0, 0), (0, 0), (1, 1), (1, 1)))                    # per-image pad ring
    x = x.reshape(c0, l1["mp"])
    x = jnp.pad(x, ((0, 0), (l1["m0"], l1["m0"])))                      # flat margins

    kernel = _make_kernel(plan)

    # vmem limit sized from the packed buffer + activations, with generous headroom.
    p_bytes = plan["rows"] * plan["cols"] * 4
    x_bytes = c0 * l1["mext"] * 4
    vmem_limit = int(min(64 * 1024 * 1024, 8 * p_bytes + 8 * x_bytes + (16 << 20)))

    # Single fused invocation: train-mode BatchNorm couples the whole batch, so the
    # forward is not tiled over N/spatial (see TODO at top for v7x dual-core).
    return pl.pallas_call(
        kernel,
        grid=(1,),
        in_specs=[_full_spec(x.shape), _full_spec(packed.shape)],
        out_specs=_full_spec((batch, 1)),
        out_shape=jax.ShapeDtypeStruct((batch, 1), jnp.float32),
        compiler_params=pltpu.CompilerParams(
            dimension_semantics=("arbitrary",),
            vmem_limit_bytes=vmem_limit),
    )(x, packed)


# TODO(synk): clip_weights (in-place parameter clamp) is a training utility, not part
# of the forward pass, so it is not implemented as a kernel.

if __name__ == "__main__":
    input_im_size = 16
    layers = 3
    channels = (4, 8, 8, 8)          # len(channels) == layers + 1
    batch = 2

    key = jax.random.PRNGKey(0)
    pkey, xkey = jax.random.split(key)
    params = init_image_critic_params(pkey, input_im_size, layers, channels)

    # One-time host-side packing (hoisted out of the forward path).
    packed = pack_image_critic_inputs(params, input_im_size, layers, channels, batch)

    # NCHW input, matching the PyTorch module.
    image = jax.random.normal(xkey, (batch, channels[0], input_im_size, input_im_size),
                              jnp.float32)

    fwd = jax.jit(image_critic_forward, static_argnums=(2, 3, 4))
    out = fwd(image, packed, input_im_size, layers, channels)
    out = jax.block_until_ready(out)
    assert out.shape == (batch, 1) and out.dtype == jnp.float32
    assert bool(jnp.all(jnp.isfinite(out)))
    print("KERNEL_OK")
</pallas_src>

<mosaic_0001>
module attributes {stable_mosaic.version = 11 : i64} {
  func.func @kernel(%arg0: i32, %arg1: memref<4x686xf32, #tpu.memory_space<vmem>>, %arg2: memref<904x222xf32, #tpu.memory_space<vmem>>, %arg3: memref<2x1xf32, #tpu.memory_space<vmem>>) attributes {dimension_semantics = [#tpu.dimension_semantics<arbitrary>], iteration_bounds = array<i64: 1>, scalar_prefetch = 0 : i64, scratch_operands = 0 : i64, tpu.core_type = #tpu.core_type<tc>, window_params = [{pipeline_mode = #tpu.pipeline_mode<synchronous>, transform_indices = @transform_0, window_bounds = array<i64: 4, 686>}, {pipeline_mode = #tpu.pipeline_mode<synchronous>, transform_indices = @transform_1, window_bounds = array<i64: 904, 222>}, {pipeline_mode = #tpu.pipeline_mode<synchronous>, transform_indices = @transform_2, window_bounds = array<i64: 2, 1>}]} {
    %c0 = arith.constant 0 : index
    %c0_0 = arith.constant 0 : index
    %0 = vector.load %arg1[%c0, %c0_0] : memref<4x686xf32, #tpu.memory_space<vmem>>, vector<4x686xf32>
    %c0_1 = arith.constant 0 : index
    %c0_2 = arith.constant 0 : index
    %1 = vector.load %arg2[%c0_1, %c0_2] : memref<904x222xf32, #tpu.memory_space<vmem>>, vector<8x36xf32>
    %c0_3 = arith.constant 0 : index
    %c36 = arith.constant 36 : index
    %2 = vector.load %arg2[%c0_3, %c36] : memref<904x222xf32, #tpu.memory_space<vmem>>, vector<8x1xf32>
    %3 = vector.extract_strided_slice %0 {offsets = [0, 0], sizes = [4, 648], strides = [1, 1]} : vector<4x686xf32> to vector<4x648xf32>
    %4 = vector.extract_strided_slice %0 {offsets = [0, 1], sizes = [4, 648], strides = [1, 1]} : vector<4x686xf32> to vector<4x648xf32>
    %5 = vector.extract_strided_slice %0 {offsets = [0, 2], sizes = [4, 648], strides = [1, 1]} : vector<4x686xf32> to vector<4x648xf32>
    %6 = vector.extract_strided_slice %0 {offsets = [0, 18], sizes = [4, 648], strides = [1, 1]} : vector<4x686xf32> to vector<4x648xf32>
    %7 = vector.extract_strided_slice %0 {offsets = [0, 19], sizes = [4, 648], strides = [1, 1]} : vector<4x686xf32> to vector<4x648xf32>
    %8 = vector.extract_strided_slice %0 {offsets = [0, 20], sizes = [4, 648], strides = [1, 1]} : vector<4x686xf32> to vector<4x648xf32>
    %9 = vector.extract_strided_slice %0 {offsets = [0, 36], sizes = [4, 648], strides = [1, 1]} : vector<4x686xf32> to vector<4x648xf32>
    %10 = vector.extract_strided_slice %0 {offsets = [0, 37], sizes = [4, 648], strides = [1, 1]} : vector<4x686xf32> to vector<4x648xf32>
    %11 = vector.extract_strided_slice %0 {offsets = [0, 38], sizes = [4, 648], strides = [1, 1]} : vector<4x686xf32> to vector<4x648xf32>
    %12 = tpu.concatenate %3, %4, %5, %6, %7, %8, %9, %10, %11 in 0 : vector<4x648xf32>, vector<4x648xf32>, vector<4x648xf32>, vector<4x648xf32>, vector<4x648xf32>, vector<4x648xf32>, vector<4x648xf32>, vector<4x648xf32>, vector<4x648xf32> -> vector<36x648xf32>
    %cst = arith.constant dense<0.000000e+00> : vector<8x648xf32>
    %13 = tpu.matmul %1, %12, %cst {dimension_numbers = #tpu.dot_dimension_numbers<[1], [0], [0], [1], [0, 0, 1, 1], [], []>} : vector<8x36xf32>, vector<36x648xf32>, vector<8x648xf32> -> vector<8x648xf32>
    %14 = vector.broadcast %2 : vector<8x1xf32> to vector<8x648xf32>
    %15 = arith.addf %13, %14 : vector<8x648xf32>
    %c8 = arith.constant 8 : index
    %c0_4 = arith.constant 0 : index
    %16 = vector.load %arg2[%c8, %c0_4] : memref<904x222xf32, #tpu.memory_space<vmem>>, vector<648x222xf32>
    %cst_5 = arith.constant dense<0.000000e+00> : vector<8x222xf32>
    %17 = tpu.matmul %15, %16, %cst_5 {dimension_numbers = #tpu.dot_dimension_numbers<[1], [0], [0], [1], [0, 0, 1, 1], [], []>} : vector<8x648xf32>, vector<648x222xf32>, vector<8x222xf32> -> vector<8x222xf32>
    %cst_6 = arith.constant 0.000000e+00 : f32
    %18 = vector.broadcast %cst_6 : f32 to vector<8x222xf32>
    %19 = arith.maximumf %17, %18 : vector<8x222xf32>
    %c664 = arith.constant 664 : index
    %c0_7 = arith.constant 0 : index
    %20 = vector.load %arg2[%c664, %c0_7] : memref<904x222xf32, #tpu.memory_space<vmem>>, vector<8x2xf32>
    %21 = vector.extract_strided_slice %20 {offsets = [0, 0], sizes = [8, 1], strides = [1, 1]} : vector<8x2xf32> to vector<8x1xf32>
    %22 = vector.extract_strided_slice %20 {offsets = [0, 1], sizes = [8, 1], strides = [1, 1]} : vector<8x2xf32> to vector<8x1xf32>
    %c672 = arith.constant 672 : index
    %c0_8 = arith.constant 0 : index
    %23 = vector.load %arg2[%c672, %c0_8] : memref<904x222xf32, #tpu.memory_space<vmem>>, vector<1x222xf32>
    %cst_9 = arith.constant dense<0.000000e+00> : vector<8xf32>
    %24 = vector.multi_reduction <add>, %19, %cst_9 [1] : vector<8x222xf32> to vector<8xf32>
    %25 = vector.shape_cast %24 : vector<8xf32> to vector<8x1xf32>
    %cst_10 = arith.constant 7.812500e-03 : f32
    %26 = vector.broadcast %cst_10 : f32 to vector<8x1xf32>
    %27 = arith.mulf %25, %26 : vector<8x1xf32>
    %28 = arith.mulf %19, %19 : vector<8x222xf32>
    %cst_11 = arith.constant dense<0.000000e+00> : vector<8xf32>
    %29 = vector.multi_reduction <add>, %28, %cst_11 [1] : vector<8x222xf32> to vector<8xf32>
    %30 = vector.shape_cast %29 : vector<8xf32> to vector<8x1xf32>
    %cst_12 = arith.constant 7.812500e-03 : f32
    %31 = vector.broadcast %cst_12 : f32 to vector<8x1xf32>
    %32 = arith.mulf %30, %31 : vector<8x1xf32>
    %33 = arith.mulf %27, %27 : vector<8x1xf32>
    %34 = arith.subf %32, %33 : vector<8x1xf32>
    %cst_13 = arith.constant 9.99999974E-6 : f32
    %35 = vector.broadcast %cst_13 : f32 to vector<8x1xf32>
    %36 = arith.addf %34, %35 : vector<8x1xf32>
    %37 = math.rsqrt %36 : vector<8x1xf32>
    %38 = arith.mulf %21, %37 : vector<8x1xf32>
    %39 = vector.broadcast %38 : vector<8x1xf32> to vector<8x222xf32>
    %40 = arith.mulf %19, %39 : vector<8x222xf32>
    %41 = arith.mulf %27, %38 : vector<8x1xf32>
    %42 = arith.subf %22, %41 : vector<8x1xf32>
    %43 = vector.broadcast %42 : vector<8x1xf32> to vector<8x222xf32>
    %44 = vector.broadcast %23 : vector<1x222xf32> to vector<8x222xf32>
    %45 = arith.mulf %43, %44 : vector<8x222xf32>
    %46 = arith.addf %40, %45 : vector<8x222xf32>
    %c656 = arith.constant 656 : index
    %c0_14 = arith.constant 0 : index
    %47 = vector.load %arg2[%c656, %c0_14] : memref<904x222xf32, #tpu.memory_space<vmem>>, vector<8x72xf32>
    %c656_15 = arith.constant 656 : index
    %c72 = arith.constant 72 : index
    %48 = vector.load %arg2[%c656_15, %c72] : memref<904x222xf32, #tpu.memory_space<vmem>>, vector<8x1xf32>
    %49 = vector.extract_strided_slice %46 {offsets = [0, 0], sizes = [8, 200], strides = [1, 1]} : vector<8x222xf32> to vector<8x200xf32>
    %50 = vector.extract_strided_slice %46 {offsets = [0, 1], sizes = [8, 200], strides = [1, 1]} : vector<8x222xf32> to vector<8x200xf32>
    %51 = vector.extract_strided_slice %46 {offsets = [0, 2], sizes = [8, 200], strides = [1, 1]} : vector<8x222xf32> to vector<8x200xf32>
    %52 = vector.extract_strided_slice %46 {offsets = [0, 10], sizes = [8, 200], strides = [1, 1]} : vector<8x222xf32> to vector<8x200xf32>
    %53 = vector.extract_strided_slice %46 {offsets = [0, 11], sizes = [8, 200], strides = [1, 1]} : vector<8x222xf32> to vector<8x200xf32>
    %54 = vector.extract_strided_slice %46 {offsets = [0, 12], sizes = [8, 200], strides = [1, 1]} : vector<8x222xf32> to vector<8x200xf32>
    %55 = vector.extract_strided_slice %46 {offsets = [0, 20], sizes = [8, 200], strides = [1, 1]} : vector<8x222xf32> to vector<8x200xf32>
    %56 = vector.extract_strided_slice %46 {offsets = [0, 21], sizes = [8, 200], strides = [1, 1]} : vector<8x222xf32> to vector<8x200xf32>
    %57 = vector.extract_strided_slice %46 {offsets = [0, 22], sizes = [8, 200], strides = [1, 1]} : vector<8x222xf32> to vector<8x200xf32>
    %58 = tpu.concatenate %49, %50, %51, %52, %53, %54, %55, %56, %57 in 0 : vector<8x200xf32>, vector<8x200xf32>, vector<8x200xf32>, vector<8x200xf32>, vector<8x200xf32>, vector<8x200xf32>, vector<8x200xf32>, vector<8x200xf32>, vector<8x200xf32> -> vector<72x200xf32>
    %cst_16 = arith.constant dense<0.000000e+00> : vector<8x200xf32>
    %59 = tpu.matmul %47, %58, %cst_16 {dimension_numbers = #tpu.dot_dimension_numbers<[1], [0], [0], [1], [0, 0, 1, 1], [], []>} : vector<8x72xf32>, vector<72x200xf32>, vector<8x200xf32> -> vector<8x200xf32>
    %60 = vector.broadcast %48 : vector<8x1xf32> to vector<8x200xf32>
    %61 = arith.addf %59, %60 : vector<8x200xf32>
    %c680 = arith.constant 680 : index
    %c0_17 = arith.constant 0 : index
    %62 = vector.load %arg2[%c680, %c0_17] : memref<904x222xf32, #tpu.memory_space<vmem>>, vector<200x86xf32>
    %cst_18 = arith.constant dense<0.000000e+00> : vector<8x86xf32>
    %63 = tpu.matmul %61, %62, %cst_18 {dimension_numbers = #tpu.dot_dimension_numbers<[1], [0], [0], [1], [0, 0, 1, 1], [], []>} : vector<8x200xf32>, vector<200x86xf32>, vector<8x86xf32> -> vector<8x86xf32>
    %cst_19 = arith.constant 0.000000e+00 : f32
    %64 = vector.broadcast %cst_19 : f32 to vector<8x86xf32>
    %65 = arith.maximumf %63, %64 : vector<8x86xf32>
    %c880 = arith.constant 880 : index
    %c0_20 = arith.constant 0 : index
    %66 = vector.load %arg2[%c880, %c0_20] : memref<904x222xf32, #tpu.memory_space<vmem>>, vector<8x72xf32>
    %c880_21 = arith.constant 880 : index
    %c72_22 = arith.constant 72 : index
    %67 = vector.load %arg2[%c880_21, %c72_22] : memref<904x222xf32, #tpu.memory_space<vmem>>, vector<8x1xf32>
    %68 = vector.extract_strided_slice %65 {offsets = [0, 0], sizes = [8, 72], strides = [1, 1]} : vector<8x86xf32> to vector<8x72xf32>
    %69 = vector.extract_strided_slice %65 {offsets = [0, 1], sizes = [8, 72], strides = [1, 1]} : vector<8x86xf32> to vector<8x72xf32>
    %70 = vector.extract_strided_slice %65 {offsets = [0, 2], sizes = [8, 72], strides = [1, 1]} : vector<8x86xf32> to vector<8x72xf32>
    %71 = vector.extract_strided_slice %65 {offsets = [0, 6], sizes = [8, 72], strides = [1, 1]} : vector<8x86xf32> to vector<8x72xf32>
    %72 = vector.extract_strided_slice %65 {offsets = [0, 7], sizes = [8, 72], strides = [1, 1]} : vector<8x86xf32> to vector<8x72xf32>
    %73 = vector.extract_strided_slice %65 {offsets = [0, 8], sizes = [8, 72], strides = [1, 1]} : vector<8x86xf32> to vector<8x72xf32>
    %74 = vector.extract_strided_slice %65 {offsets = [0, 12], sizes = [8, 72], strides = [1, 1]} : vector<8x86xf32> to vector<8x72xf32>
    %75 = vector.extract_strided_slice %65 {offsets = [0, 13], sizes = [8, 72], strides = [1, 1]} : vector<8x86xf32> to vector<8x72xf32>
    %76 = vector.extract_strided_slice %65 {offsets = [0, 14], sizes = [8, 72], strides = [1, 1]} : vector<8x86xf32> to vector<8x72xf32>
    %77 = tpu.concatenate %68, %69, %70, %71, %72, %73, %74, %75, %76 in 0 : vector<8x72xf32>, vector<8x72xf32>, vector<8x72xf32>, vector<8x72xf32>, vector<8x72xf32>, vector<8x72xf32>, vector<8x72xf32>, vector<8x72xf32>, vector<8x72xf32> -> vector<72x72xf32>
    %cst_23 = arith.constant dense<0.000000e+00> : vector<8x72xf32>
    %78 = tpu.matmul %66, %77, %cst_23 {dimension_numbers = #tpu.dot_dimension_numbers<[1], [0], [0], [1], [0, 0, 1, 1], [], []>} : vector<8x72xf32>, vector<72x72xf32>, vector<8x72xf32> -> vector<8x72xf32>
    %79 = vector.broadcast %67 : vector<8x1xf32> to vector<8x72xf32>
    %80 = arith.addf %78, %79 : vector<8x72xf32>
    %c888 = arith.constant 888 : index
    %c0_24 = arith.constant 0 : index
    %81 = vector.load %arg2[%c888, %c0_24] : memref<904x222xf32, #tpu.memory_space<vmem>>, vector<8x72xf32>
    %c888_25 = arith.constant 888 : index
    %c72_26 = arith.constant 72 : index
    %82 = vector.load %arg2[%c888_25, %c72_26] : memref<904x222xf32, #tpu.memory_space<vmem>>, vector<1x1xf32>
    %83 = arith.mulf %80, %81 : vector<8x72xf32>
    %cst_27 = arith.constant dense<0.000000e+00> : vector<72xf32>
    %84 = vector.multi_reduction <add>, %83, %cst_27 [0] : vector<8x72xf32> to vector<72xf32>
    %85 = vector.shape_cast %84 : vector<72xf32> to vector<1x72xf32>
    %c896 = arith.constant 896 : index
    %c0_28 = arith.constant 0 : index
    %86 = vector.load %arg2[%c896, %c0_28] : memref<904x222xf32, #tpu.memory_space<vmem>>, vector<2x72xf32>
    %87 = vector.broadcast %85 : vector<1x72xf32> to vector<2x72xf32>
    %88 = arith.mulf %86, %87 : vector<2x72xf32>
    %cst_29 = arith.constant dense<0.000000e+00> : vector<2xf32>
    %89 = vector.multi_reduction <add>, %88, %cst_29 [1] : vector<2x72xf32> to vector<2xf32>
    %90 = vector.shape_cast %89 : vector<2xf32> to vector<2x1xf32>
    %91 = vector.broadcast %82 : vector<1x1xf32> to vector<2x1xf32>
    %92 = arith.addf %90, %91 : vector<2x1xf32>
    %c0_30 = arith.constant 0 : index
    %c0_31 = arith.constant 0 : index
    %93 = vector.load %arg3[%c0_30, %c0_31] : memref<2x1xf32, #tpu.memory_space<vmem>>, vector<2x1xf32>
    tpu.vector_store %arg3[%c0_30, %c0_31], %92 {strides = array<i32>} : memref<2x1xf32, #tpu.memory_space<vmem>>, vector<2x1xf32>,
    return
  }
  func.func @transform_0(%arg0: i32) -> (i32, i32) {
    %c0_i32 = arith.constant 0 : i32
    %c0_i32_0 = arith.constant 0 : i32
    %c0_i32_1 = arith.constant 0 : i32
    return %c0_i32, %c0_i32_0 : i32, i32
  }
  func.func @transform_1(%arg0: i32) -> (i32, i32) {
    %c0_i32 = arith.constant 0 : i32
    %c0_i32_0 = arith.constant 0 : i32
    %c0_i32_1 = arith.constant 0 : i32
    return %c0_i32, %c0_i32_0 : i32, i32
  }
  func.func @transform_2(%arg0: i32) -> (i32, i32) {
    %c0_i32 = arith.constant 0 : i32
    %c0_i32_0 = arith.constant 0 : i32
    %c0_i32_1 = arith.constant 0 : i32
    return %c0_i32, %c0_i32_0 : i32, i32
  }
}

</mosaic_0001>

<bundles_post_ra>
// kernel: image_critic_forward.1
= control target key start
LH: loop header
LB: loop body
LE: loop exit
PB: predicated region body
PF: predicated region fallthrough
CT: control target
= control target key end

     0   :  { %s1719_s13 = smov 110   ;;  %s1720_s14 = smov 127   ;;  %v1726_v8 = vmov 0.0   ;;  %v1728_v14 = vmov 36   ;;  %vm39_vm0 = vcmask 1039360   ;;  %vm87_vm1 = vcmask 900096   ;;  %s2629_s0 = inlined_call_operand.vmem [shape: f32[4,686], index: 0, kind: input, shape index: {}]   ;;  %s2630_s1 = inlined_call_operand.vmem [shape: f32[904,222], index: 1, kind: input, shape index: {}]   ;;  %s2631_s2 = inlined_call_operand.vmem [shape: f32[2,1], index: 2, kind: output, shape index: {}]  }
   0x1   :  { %v1764_v0 = vld [vmem:[%s2629_s0] sm:$0xff]  ;;  %v1769_v1 = vld [vmem:[%s2629_s0 + $0x8] sm:$0xff]  ;;  %s1721_s15 = smov 126   ;;  %s1722_s16 = smov 108   ;;  %v1799_v7 = vld [vmem:[%s2629_s0 + $0x10] sm:$0xff]  ;;  %322 = vmatprep.mubr.f32.mxu0 %v1726_v8  ;;  %393 = vmatprep.mubr.f32.mxu1 %v1726_v8  ;;  %vm63_vm2 = vcmask 1031168  }
   0x2   :  { %v25_v2 = vcombine.low %v1769_v1, %v1769_v1  ;;  %v1775_v3 = vcombine.high %v1764_v0, %v1764_v0  ;;  %v24_v5 = vcombine.low %v1764_v0, %v1764_v0  ;;  %s1723_s17 = smov 109   ;;  %s1724_s18 = smov 91   ;;  %v26_v9 = vcombine.low %v1799_v7, %v1799_v7  ;;  %1672 = vset.pattern.permute.xlu0 %v1728_v14  ;;  %v1849_v15 = vld [vmem:[%s2630_s1] sm:$0xff] }
   0x3   :  { %s1725_s19 = smov 92   ;;  %s1727_s22 = smov 90   ;;  %v1813_v11 = vcombine.high %v1769_v1, %v1769_v1  ;;  %v1823_v13 = vcombine.high %v1799_v7, %v1799_v7  ;;  %vm213_vm3 = vcmask 1043456   ;;  %vm135_vm4 = vcmask 883712  }
   0x4   :  { %v1612_v4 = vpack.i.bf16 %v25_v2, %v1764_v0  ;;  %v1607_v6 = vpack.i.bf16 %v1769_v1, %v1775_v3  ;;  %v1637_v10 = vpack.i.bf16 %v26_v9, %v1769_v1  ;;  %vm111_vm5 = vcmask 891904   ;;  %s1731_s10 = smov 1   ;;  %s1739_s21 = smov 122  }
   0x5   :  { %v1642_v12 = vpack.i.bf16 %v1799_v7, %v1813_v11  ;;  %vm183_vm6 = vcmask 744448   ;;  %vm159_vm7 = vcmask 752640   ;;  %vm207_vm8 = vcmask 736256   ;;  %s1743_s0 = smov 121   ;;  %s1744_s25 = smov 114  }
   0x6   :  { %1613 = vrot.lane.b32.xlu1 %v1612_v4, %s1719_s13  ;;  %1603 = vrot.lane.b32.xlu0 %v1612_v4, %s1720_s14  ;;  %vm243_vm9 = vcmask 293888   ;;  %vm633_vm10 = vcmask 64512   ;;  %vm855_vm11 = vcmask 769024   ;;  %vm927_vm12 = vcmask 965632   ;;  %s1745_s29 = smov 56  }
   0x7   :  { %vm935_vm13 = vcmask 957440   ;;  %vm943_vm14 = vcmask 949248   ;;  %vm958_vm15 = vcmask 875520  }
   0xa   :  { %27 = vrot.lane.b32.xlu1 %v24_v5, %s1720_s14  ;;  %1608 = vrot.lane.b32.xlu0 %v1607_v6, %s1721_s15 }
   0xe   :  { %75 = vrot.lane.b32.xlu1 %v24_v5, %s1719_s13  ;;  %51 = vrot.lane.b32.xlu0 %v1764_v0, %s1721_s15 }
  0x12   :  { %1623 = vrot.lane.b32.xlu1 %v1612_v4, %s1722_s16  ;;  %1618 = vrot.lane.b32.xlu0 %v1607_v6, %s1723_s17 }
  0x16   :  { %1633 = vrot.lane.b32.xlu1 %v1612_v4, %s1724_s18  ;;  %1628 = vrot.lane.b32.xlu0 %v1607_v6, %s1725_s19 }
  0x1a   :  { %123 = vrot.lane.b32.xlu1 %v24_v5, %s1722_s16  ;;  %99 = vrot.lane.b32.xlu0 %v1764_v0, %s1723_s17 }
  0x1e   :  { %171 = vrot.lane.b32.xlu1 %v24_v5, %s1724_s18  ;;  %147 = vrot.lane.b32.xlu0 %v1764_v0, %s1725_s19 }
  0x22   :  { %199 = vrot.lane.b32.xlu1 %v1769_v1, %s1727_s22  ;;  %197 = vrot.lane.b32.xlu0 %v1775_v3, %s1727_s22 }
  0x26   :  { %1638 = vrot.lane.b32.xlu1 %v1637_v10, %s1720_s14  ;;  %195 = vrot.lane.b32.xlu0 %v1764_v0, %s1727_s22 }
  0x2a   :  { %1648 = vrot.lane.b32.xlu1 %v1637_v10, %s1719_s13  ;;  %1643 = vrot.lane.b32.xlu0 %v1642_v12, %s1721_s15 }
  0x2e   :  { %61 = vrot.lane.b32.xlu1 %v1823_v13, %s1721_s15  ;;  %37 = vrot.lane.b32.xlu0 %v1799_v7, %s1720_s14 }
  0x32   :  { %1653 = vrot.lane.b32.xlu1 %v1642_v12, %s1723_s17  ;;  %85 = vrot.lane.b32.xlu0 %v1799_v7, %s1719_s13  ;;  %s1732_s13 = smov 106  }
  0x36   :  { %1663 = vrot.lane.b32.xlu1 %v1642_v12, %s1725_s19  ;;  %1658 = vrot.lane.b32.xlu0 %v1637_v10, %s1722_s16 }
  0x3a   :  { %109 = vrot.lane.b32.xlu1 %v1823_v13, %s1723_s17  ;;  %1668 = vrot.lane.b32.xlu0 %v1637_v10, %s1724_s18  ;;  %s1733_s17 = smov 118  }
  0x3e   :  { %157 = vrot.lane.b32.xlu1 %v1823_v13, %s1725_s19  ;;  %133 = vrot.lane.b32.xlu0 %v1799_v7, %s1722_s16  ;;  %s1735_s19 = smov 116  }
  0x42   :  { %201 = vrot.lane.b32.xlu1 %v1813_v11, %s1727_s22  ;;  %181 = vrot.lane.b32.xlu0 %v1799_v7, %s1724_s18  ;;  %s1734_s18 = smov 117  }
  0x46   :  { %203 = vrot.lane.b32.xlu0 %v1799_v7, %s1727_s22  ;;  %205 = vrot.lane.b32.xlu1 %v1823_v13, %s1727_s22  ;;  %s1737_s22 = smov 107  }
  0x4a   :  { %240 = vperm.xlu0 %1672, %v1849_v15  }
  0x78   :  { %v1852_v16 = vpop.permute.xlu1 %1613  ;;  %v1854_v17 = vpop.permute.xlu0 %1603 }
  0x79   :  { %v1606_v18 = vunpack.i.h.bf16 %v1854_v17  ;;  %v1605_v19 = vunpack.i.l.bf16 %v1854_v17  ;;  %v1616_v20 = vunpack.i.h.bf16 %v1852_v16  ;;  %v1615_v21 = vunpack.i.l.bf16 %v1852_v16 }
  0x7b   :  { %v41_v26 = vsel %vm39_vm0, %v1605_v19, %v1606_v18  ;;  %v89_v29 = vsel %vm87_vm1, %v1615_v21, %v1616_v20 }
  0x7c   :  { %v28_v22 = vpop.permute.xlu1 %27  ;;  %v1860_v23 = vpop.permute.xlu0 %1608  ;;  %v215_v32 = vsel %vm213_vm3, %v1775_v3, %v41_v26 }
  0x7d   :  { %v1611_v24 = vunpack.i.h.bf16 %v1860_v23  ;;  %v1610_v25 = vunpack.i.l.bf16 %v1860_v23  ;;  %v40_v27 = vsel %vm39_vm0, %v28_v22, %v1605_v19 }
  0x7e   :  { %v214_v37 = vsel %vm213_vm3, %v1764_v0, %v40_v27 }
  0x7f   :  { %v65_v28 = vsel %vm63_vm2, %v1610_v25, %v1611_v24 }
  0x80   :  { %v76_v30 = vpop.permute.xlu1 %75  ;;  %v52_v31 = vpop.permute.xlu0 %51  ;;  %v221_v33 = vsel %vm213_vm3, %v65_v28, %v89_v29 }
  0x81   :  { %v88_v34 = vsel %vm87_vm1, %v76_v30, %v1615_v21  ;;  %v64_v35 = vsel %vm63_vm2, %v52_v31, %v1610_v25  ;;  %v1323_v36 = vpack.c.bf16 %v221_v33, %v215_v32 }
  0x82   :  { %v220_v38 = vsel %vm213_vm3, %v64_v35, %v88_v34 }
  0x83   :  { %1324 = vmatprep.subr.bf16.mxu0 %v1323_v36  ;;  %v1325_v39 = vpack.c.bf16 %v220_v38, %v214_v37 }
  0x84   :  { %v1882_v40 = vpop.permute.xlu1 %1623  ;;  %v1884_v41 = vpop.permute.xlu0 %1618 }
  0x85   :  { %v1626_v42 = vunpack.i.h.bf16 %v1882_v40  ;;  %v1625_v43 = vunpack.i.l.bf16 %v1882_v40  ;;  %v1621_v44 = vunpack.i.h.bf16 %v1884_v41  ;;  %v1620_v45 = vunpack.i.l.bf16 %v1884_v41  ;;  %1326 = vmatpush1.bf16.msra.mxu0 %v1325_v39 }
  0x87   :  { %v137_v46 = vsel %vm135_vm4, %v1625_v43, %v1626_v42  ;;  %v113_v47 = vsel %vm111_vm5, %v1620_v45, %v1621_v44 }
  0x88   :  { %v1896_v48 = vpop.permute.xlu1 %1633  ;;  %v1898_v49 = vpop.permute.xlu0 %1628  ;;  %v227_v58 = vsel %vm213_vm3, %v113_v47, %v137_v46 }
  0x89   :  { %v1636_v50 = vunpack.i.h.bf16 %v1896_v48  ;;  %v1635_v51 = vunpack.i.l.bf16 %v1896_v48  ;;  %v1631_v52 = vunpack.i.h.bf16 %v1898_v49  ;;  %v1630_v53 = vunpack.i.l.bf16 %v1898_v49 }
  0x8b   :  { %v185_v54 = vsel %vm183_vm6, %v1635_v51, %v1636_v50  ;;  %v161_v55 = vsel %vm159_vm7, %v1630_v53, %v1631_v52 }
  0x8c   :  { %v124_v56 = vpop.permute.xlu1 %123  ;;  %v100_v57 = vpop.permute.xlu0 %99  ;;  %v233_v59 = vsel %vm213_vm3, %v161_v55, %v185_v54 }
  0x8d   :  { %v1327_v60 = vpack.c.bf16 %v233_v59, %v227_v58  ;;  %v136_v61 = vsel %vm135_vm4, %v124_v56, %v1625_v43  ;;  %v112_v62 = vsel %vm111_vm5, %v100_v57, %v1620_v45 }
  0x8e   :  { %v226_v4 = vsel %vm213_vm3, %v112_v62, %v136_v61 }
  0x8f   :  { %1328 = vmatprep.subr.bf16.mxu0 %v1327_v60 }
  0x90   :  { %v172_v63 = vpop.permute.xlu1 %171  ;;  %v148_v0 = vpop.permute.xlu0 %147 }
  0x91   :  { %v184_v2 = vsel %vm183_vm6, %v172_v63, %v1635_v51  ;;  %v160_v3 = vsel %vm159_vm7, %v148_v0, %v1630_v53 }
  0x92   :  { %v232_v5 = vsel %vm213_vm3, %v160_v3, %v184_v2 }
  0x93   :  { %v1329_v6 = vpack.c.bf16 %v232_v5, %v226_v4 }
  0x94   :  { %v1918_v9 = vpop.permute.xlu1 %199  ;;  %v198_v10 = vpop.permute.xlu0 %197 }
  0x95   :  { %v209_v12 = vsel %vm207_vm8, %v198_v10, %v1918_v9  ;;  %1330 = vmatpush1.bf16.msra.mxu0 %v1329_v6 }
  0x96   :  { %1278 = vmatprep.subr.msk.mxu0 %vm213_vm3, %v209_v12 }
  0x98   :  { %v1639_v14 = vpop.permute.xlu1 %1638  ;;  %v196_v19 = vpop.permute.xlu0 %195 }
  0x99   :  { %v1641_v21 = vunpack.i.h.bf16 %v1639_v14  ;;  %v1640_v22 = vunpack.i.l.bf16 %v1639_v14  ;;  %v208_v25 = vsel %vm207_vm8, %v196_v19, %v198_v10 }
  0x9a   :  { %1279 = vmatpush1.msk.msra.mxu0 %vm213_vm3, %v208_v25 }
  0x9b   :  { %1280 = vmatmul.mubr.msk.f32.vlgmr.msra.gmra.mrb[0].mxu0 %vm243_vm9, %v1849_v15  ;;  %v43_v26 = vsel %vm39_vm0, %v1640_v22, %v1641_v21  ;;  %v42_v34 = vsel %vm39_vm0, %v1606_v18, %v1640_v22 }
  0x9c   :  { %v1649_v27 = vpop.permute.xlu1 %1648  ;;  %v1644_v28 = vpop.permute.xlu0 %1643  ;;  %464 = vmatprep.mubr.f32.mxu0 %v1726_v8  ;;  %v217_v33 = vsel %vm213_vm3, %v1813_v11, %v43_v26  ;;  %v216_v46 = vsel %vm213_vm3, %v1769_v1, %v42_v34  ;;  %v474_v34 = vld [vmem:[%s2630_s1 + $0x28] sm:$0xff] }
  0x9d   :  { %v1651_v29 = vunpack.i.h.bf16 %v1649_v27  ;;  %v1650_v30 = vunpack.i.l.bf16 %v1649_v27  ;;  %v1646_v31 = vunpack.i.h.bf16 %v1644_v28  ;;  %v1645_v32 = vunpack.i.l.bf16 %v1644_v28 }
  0x9f   :  { %v67_v35 = vsel %vm63_vm2, %v1645_v32, %v1646_v31  ;;  %v91_v36 = vsel %vm87_vm1, %v1650_v30, %v1651_v29  ;;  %v66_v37 = vsel %vm63_vm2, %v1611_v24, %v1645_v32  ;;  %v90_v38 = vsel %vm87_vm1, %v1616_v20, %v1650_v30 }
  0xa0   :  { %v62_v39 = vpop.permute.xlu1 %61  ;;  %v38_v43 = vpop.permute.xlu0 %37  ;;  %v223_v11 = vsel %vm213_vm3, %v67_v35, %v91_v36  ;;  %v222_v17 = vsel %vm213_vm3, %v66_v37, %v90_v38  ;;  %v471_v37 = vld [vmem:[%s2630_s1 + $0x10] sm:$0xff]  ;;  %v473_v38 = vld [vmem:[%s2630_s1 + $0x20] sm:$0xff] }
  0xa1   :  { %v44_v18 = vsel %vm39_vm0, %v1641_v21, %v38_v43  ;;  %v1331_v45 = vpack.c.bf16 %v223_v11, %v217_v33  ;;  %v1333_v47 = vpack.c.bf16 %v222_v17, %v216_v46  ;;  %v68_v23 = vsel %vm63_vm2, %v1646_v31, %v62_v39  ;;  %v472_v33 = vld [vmem:[%s2630_s1 + $0x18] sm:$0xff]  ;;  %v478_v11 = vld [vmem:[%s2630_s1 + $0x48] sm:$0xff] }
  0xa2   :  { %v219_v16 = vsel %vm213_vm3, %v1823_v13, %v38_v43  ;;  %v218_v20 = vsel %vm213_vm3, %v1799_v7, %v44_v18  ;;  %v476_v43 = vld [vmem:[%s2630_s1 + $0x38] sm:$0xff] }
  0xa3   :  { %1332 = vmatprep.subr.bf16.mxu1 %v1331_v45  ;;  %v1347_v45 = vpack.c.bf16 %v474_v34, %v472_v33 }
  0xa4   :  { %v1654_v24 = vpop.permute.xlu1 %1653  ;;  %v86_v51 = vpop.permute.xlu0 %85  ;;  %1334 = vmatpush1.bf16.msra.mxu1 %v1333_v47  ;;  %v1349_v47 = vpack.c.bf16 %v473_v38, %v471_v37  ;;  %v512_v37 = vld [vmem:[%s2630_s1 + $0x158] sm:$0xff]  ;;  %v514_v38 = vld [vmem:[%s2630_s1 + $0x168] sm:$0xff] }
  0xa5   :  { %v92_v53 = vsel %vm87_vm1, %v1651_v29, %v86_v51  ;;  %v225_v54 = vsel %vm213_vm3, %v62_v39, %v86_v51  ;;  %v1656_v56 = vunpack.i.h.bf16 %v1654_v24  ;;  %v1655_v13 = vunpack.i.l.bf16 %v1654_v24  ;;  %v475_v24 = vld [vmem:[%s2630_s1 + $0x30] sm:$0xff]  ;;  %v477_v51 = vld [vmem:[%s2630_s1 + $0x40] sm:$0xff] }
  0xa6   :  { %v224_v55 = vsel %vm213_vm3, %v68_v23, %v92_v53  ;;  %v1339_v1 = vpack.c.bf16 %v225_v54, %v219_v16  ;;  %v482_v53 = vld [vmem:[%s2630_s1 + $0x68] sm:$0xff]  ;;  %v1353_v54 = vpack.c.bf16 %v477_v51, %v475_v24  ;;  %vm975_vm1 = vcmask 588800  }
  0xa7   :  { %v1341_v57 = vpack.c.bf16 %v224_v55, %v218_v20  ;;  %v115_v7 = vsel %vm111_vm5, %v1655_v13, %v1656_v56  ;;  %v114_v22 = vsel %vm111_vm5, %v1621_v44, %v1655_v13  ;;  %v1351_v20 = vpack.c.bf16 %v478_v11, %v476_v43  ;;  %v483_v13 = vld [vmem:[%s2630_s1 + $0x70] sm:$0xff]  ;;  %v522_v24 = vld [vmem:[%s2630_s1 + $0x1a8] sm:$0xff] }
  0xa8   :  { %v1664_v58 = vpop.permute.xlu1 %1663  ;;  %v1659_v59 = vpop.permute.xlu0 %1658  ;;  %1340 = vmatprep.subr.bf16.mxu0 %v1339_v1  ;;  %v479_v1 = vld [vmem:[%s2630_s1 + $0x50] sm:$0xff]  ;;  %v1387_v43 = vpack.c.bf16 %v514_v38, %v512_v37  ;;  %v616_v38 = vld [vmem:[%s2630_s1 + $0x498] sm:$0xff] }
  0xa9   :  { %v1666_v60 = vunpack.i.h.bf16 %v1664_v58  ;;  %v1661_v61 = vunpack.i.h.bf16 %v1659_v59  ;;  %v1660_v62 = vunpack.i.l.bf16 %v1659_v59  ;;  %1342 = vmatpush1.bf16.msra.mxu0 %v1341_v57  ;;  %v1665_v63 = vunpack.i.l.bf16 %v1664_v58  ;;  %v484_v57 = vld [vmem:[%s2630_s1 + $0x78] sm:$0xff]  ;;  %v486_v58 = vld [vmem:[%s2630_s1 + $0x88] sm:$0xff]  ;;  %v511_v11 = vld [vmem:[%s2630_s1 + $0x150] sm:$0xff] }
  0xaa   :  { %v1359_v59 = vpack.c.bf16 %v486_v58, %v484_v57  ;;  %v523_v58 = vld [vmem:[%s2630_s1 + $0x1b0] sm:$0xff] }
  0xab   :  { %v139_v0 = vsel %vm135_vm4, %v1660_v62, %v1661_v61  ;;  %v163_v4 = vsel %vm159_vm7, %v1665_v63, %v1666_v60  ;;  %v138_v10 = vsel %vm135_vm4, %v1626_v42, %v1660_v62  ;;  %v162_v14 = vsel %vm159_vm7, %v1631_v52, %v1665_v63  ;;  %v490_v62 = vld [vmem:[%s2630_s1 + $0xa8] sm:$0xff] }
  0xac   :  { %v110_v2 = vpop.permute.xlu1 %109  ;;  %v1669_v3 = vpop.permute.xlu0 %1668  ;;  %v229_v12 = vsel %vm213_vm3, %v115_v7, %v139_v0  ;;  %v228_v48 = vsel %vm213_vm3, %v114_v22, %v138_v10  ;;  %v487_v0 = vld [vmem:[%s2630_s1 + $0x90] sm:$0xff] }
  0xad   :  { %v1671_v5 = vunpack.i.h.bf16 %v1669_v3  ;;  %v1670_v6 = vunpack.i.l.bf16 %v1669_v3  ;;  %v116_v49 = vsel %vm111_vm5, %v1656_v56, %v110_v2  ;;  %v481_v56 = vld [vmem:[%s2630_s1 + $0x60] sm:$0xff]  ;;  %v492_v3 = vld [vmem:[%s2630_s1 + $0xb8] sm:$0xff]  ;;  %v491_v10 = vld [vmem:[%s2630_s1 + $0xb0] sm:$0xff] }
  0xaf   :  { %v186_v19 = vsel %vm183_vm6, %v1636_v50, %v1670_v6  ;;  %v187_v21 = vsel %vm183_vm6, %v1670_v6, %v1671_v5 }
  0xb0   :  { %v158_v25 = vpop.permute.xlu1 %157  ;;  %v134_v40 = vpop.permute.xlu0 %133  ;;  %v235_v42 = vsel %vm213_vm3, %v163_v4, %v187_v21  ;;  %v234_v26 = vsel %vm213_vm3, %v162_v14, %v186_v19  ;;  %v494_v4 = vld [vmem:[%s2630_s1 + $0xc8] sm:$0xff]  ;;  %v496_v14 = vld [vmem:[%s2630_s1 + $0xd8] sm:$0xff] }
  0xb1   :  { %v140_v52 = vsel %vm135_vm4, %v1661_v61, %v134_v40  ;;  %v1335_v27 = vpack.c.bf16 %v235_v42, %v229_v12  ;;  %v1337_v50 = vpack.c.bf16 %v234_v26, %v228_v48  ;;  %v164_v28 = vsel %vm159_vm7, %v1666_v60, %v158_v25  ;;  %v485_v60 = vld [vmem:[%s2630_s1 + $0x80] sm:$0xff]  ;;  %v488_v61 = vld [vmem:[%s2630_s1 + $0x98] sm:$0xff]  ;;  %v498_v19 = vld [vmem:[%s2630_s1 + $0xe8] sm:$0xff] }
  0xb2   :  { %v231_v41 = vsel %vm213_vm3, %v110_v2, %v134_v40  ;;  %v230_v44 = vsel %vm213_vm3, %v116_v49, %v140_v52  ;;  %v1361_v7 = vpack.c.bf16 %v485_v60, %v483_v13  ;;  %v1363_v63 = vpack.c.bf16 %v490_v62, %v488_v61  ;;  %v489_v2 = vld [vmem:[%s2630_s1 + $0xa0] sm:$0xff]  ;;  %v500_v42 = vld [vmem:[%s2630_s1 + $0xf8] sm:$0xff]  ;;  %v502_v26 = vld [vmem:[%s2630_s1 + $0x108] sm:$0xff] }
  0xb3   :  { %1336 = vmatprep.subr.bf16.mxu1 %v1335_v27  ;;  %v1367_v6 = vpack.c.bf16 %v494_v4, %v492_v3  ;;  %v493_v12 = vld [vmem:[%s2630_s1 + $0xc0] sm:$0xff]  ;;  %v1371_v22 = vpack.c.bf16 %v498_v19, %v496_v14  ;;  %v1375_v52 = vpack.c.bf16 %v502_v26, %v500_v42  ;;  %v499_v27 = vld [vmem:[%s2630_s1 + $0xf0] sm:$0xff]  ;;  %v530_v13 = vld [vmem:[%s2630_s1 + $0x1e8] sm:$0xff] }
  0xb4   :  { %v202_v29 = vpop.permute.xlu1 %201  ;;  %v182_v30 = vpop.permute.xlu0 %181  ;;  %1338 = vmatpush1.bf16.msra.mxu1 %v1337_v50  ;;  %v1369_v21 = vpack.c.bf16 %v493_v12, %v491_v10  ;;  %v497_v40 = vld [vmem:[%s2630_s1 + $0xe0] sm:$0xff]  ;;  %v504_v50 = vld [vmem:[%s2630_s1 + $0x118] sm:$0xff]  ;;  %v527_v62 = vld [vmem:[%s2630_s1 + $0x1d0] sm:$0xff] }
  0xb5   :  { %v188_v31 = vsel %vm183_vm6, %v1671_v5, %v182_v30  ;;  %v237_v32 = vsel %vm213_vm3, %v158_v25, %v182_v30  ;;  %v210_v23 = vsel %vm207_vm8, %v1918_v9, %v202_v29  ;;  %v480_v9 = vld [vmem:[%s2630_s1 + $0x58] sm:$0xff]  ;;  %v1365_v5 = vpack.c.bf16 %v489_v2, %v487_v0  ;;  %v495_v25 = vld [vmem:[%s2630_s1 + $0xd0] sm:$0xff]  ;;  %v501_v48 = vld [vmem:[%s2630_s1 + $0x100] sm:$0xff] }
  0xb6   :  { %v236_v35 = vsel %vm213_vm3, %v164_v28, %v188_v31  ;;  %v1343_v36 = vpack.c.bf16 %v237_v32, %v231_v41  ;;  %v1355_v55 = vpack.c.bf16 %v482_v53, %v480_v9  ;;  %v1373_v49 = vpack.c.bf16 %v497_v40, %v495_v25  ;;  %v506_v28 = vld [vmem:[%s2630_s1 + $0x128] sm:$0xff]  ;;  %v505_v30 = vld [vmem:[%s2630_s1 + $0x120] sm:$0xff]  ;;  %v508_v31 = vld [vmem:[%s2630_s1 + $0x138] sm:$0xff] }
  0xb7   :  { %v1345_v39 = vpack.c.bf16 %v236_v35, %v230_v44  ;;  %v1377_v41 = vpack.c.bf16 %v501_v48, %v499_v27  ;;  %v1379_v44 = vpack.c.bf16 %v506_v28, %v504_v50  ;;  %v510_v32 = vld [vmem:[%s2630_s1 + $0x148] sm:$0xff]  ;;  %v507_v35 = vld [vmem:[%s2630_s1 + $0x130] sm:$0xff]  ;;  %v533_v4 = vld [vmem:[%s2630_s1 + $0x200] sm:$0xff] }
  0xb8   :  { %v204_v17 = vpop.permute.xlu0 %203  ;;  %1344 = vmatprep.subr.bf16.mxu0 %v1343_v36  ;;  %v206_v18 = vpop.permute.xlu1 %205  ;;  %v1383_v34 = vpack.c.bf16 %v510_v32, %v508_v31  ;;  %v509_v36 = vld [vmem:[%s2630_s1 + $0x140] sm:$0xff]  ;;  %v519_v53 = vld [vmem:[%s2630_s1 + $0x190] sm:$0xff]  ;;  %v534_v0 = vld [vmem:[%s2630_s1 + $0x208] sm:$0xff] }
  0xb9   :  { %v211_v46 = vsel %vm207_vm8, %v202_v29, %v204_v17  ;;  %1346 = vmatpush1.bf16.msra.mxu0 %v1345_v39  ;;  %v212_v16 = vsel %vm207_vm8, %v204_v17, %v206_v18  ;;  %v503_v29 = vld [vmem:[%s2630_s1 + $0x110] sm:$0xff]  ;;  %v1385_v39 = vpack.c.bf16 %v509_v36, %v507_v35  ;;  %v513_v17 = vld [vmem:[%s2630_s1 + $0x160] sm:$0xff]  ;;  %v600_v10 = vld [vmem:[%s2630_s1 + $0x418] sm:$0xff] }
  0xba   :  { %1281 = vmatprep.subr.msk.mxu1 %vm213_vm3, %v211_v46  ;;  %1284 = vmatprep.subr.msk.mxu0 %vm213_vm3, %v206_v18  ;;  %v1381_v33 = vpack.c.bf16 %v505_v30, %v503_v29  ;;  %v516_v18 = vld [vmem:[%s2630_s1 + $0x178] sm:$0xff]  ;;  %v1389_v46 = vpack.c.bf16 %v513_v17, %v511_v11  ;;  %v531_v3 = vld [vmem:[%s2630_s1 + $0x1f0] sm:$0xff]  ;;  %v602_v12 = vld [vmem:[%s2630_s1 + $0x428] sm:$0xff] }
  0xbb   :  { %1282 = vmatpush1.msk.msra.mxu1 %vm213_vm3, %v210_v23  ;;  %v515_v23 = vld [vmem:[%s2630_s1 + $0x170] sm:$0xff]  ;;  %v538_v14 = vld [vmem:[%s2630_s1 + $0x228] sm:$0xff]  ;;  %v1475_v19 = vpack.c.bf16 %v602_v12, %v600_v10  ;;  %v1409_v40 = vpack.c.bf16 %v533_v4, %v531_v3  ;;  %v604_v26 = vld [vmem:[%s2630_s1 + $0x438] sm:$0xff] }
  0xbc   :  { %1283 = vmatmul.mubr.msk.f32.vlgmr.msra.gmra.mrb[0].mxu1 %vm243_vm9, %v1849_v15  ;;  %1348 = vmatprep.subr.bf16.mxu1 %v1347_v45  ;;  %v518_v45 = vld [vmem:[%s2630_s1 + $0x188] sm:$0xff]  ;;  %v603_v27 = vld [vmem:[%s2630_s1 + $0x430] sm:$0xff]  ;;  %v605_v48 = vld [vmem:[%s2630_s1 + $0x440] sm:$0xff] }
  0xbd   :  { %1285 = vmatpush1.msk.msra.mxu0 %vm213_vm3, %v212_v16  ;;  %1350 = vmatpush1.bf16.msra.mxu1 %v1349_v47  ;;  %v1391_v47 = vpack.c.bf16 %v518_v45, %v516_v18  ;;  %v517_v16 = vld [vmem:[%s2630_s1 + $0x180] sm:$0xff]  ;;  %v1481_v50 = vpack.c.bf16 %v605_v48, %v603_v27  ;;  %v608_v28 = vld [vmem:[%s2630_s1 + $0x458] sm:$0xff]  ;;  %v607_v29 = vld [vmem:[%s2630_s1 + $0x450] sm:$0xff]  ;;  %vm1263_vm3 = vcmask 582656  }
  0xbe   :  { %1286 = vmatmul.mubr.msk.f32.vlgmr.msra.gmra.mrb[2].mxu0 %vm243_vm9, %v1849_v15  ;;  %1352 = vmatprep.subr.bf16.mxu1 %v1351_v20  ;;  %v1357_v15 = vpack.c.bf16 %v481_v56, %v479_v1  ;;  %v520_v20 = vld [vmem:[%s2630_s1 + $0x198] sm:$0xff]  ;;  %v1393_v51 = vpack.c.bf16 %v517_v16, %v515_v23  ;;  %v526_v1 = vld [vmem:[%s2630_s1 + $0x1c8] sm:$0xff]  ;;  %v609_v30 = vld [vmem:[%s2630_s1 + $0x460] sm:$0xff] }
  0xbf   :  { %v1395_v9 = vpack.c.bf16 %v522_v24, %v520_v20  ;;  %1476 = vmatprep.subr.bf16.mxu0 %v1475_v19  ;;  %v1485_v31 = vpack.c.bf16 %v609_v30, %v607_v29  ;;  %v612_v32 = vld [vmem:[%s2630_s1 + $0x478] sm:$0xff]  ;;  %v611_v35 = vld [vmem:[%s2630_s1 + $0x470] sm:$0xff]  ;;  %v613_v36 = vld [vmem:[%s2630_s1 + $0x480] sm:$0xff] }
  0xc0   :  { %v1489_v37 = vpack.c.bf16 %v613_v36, %v611_v35  ;;  %v615_v11 = vld [vmem:[%s2630_s1 + $0x490] sm:$0xff]  ;;  %v617_v17 = vld [vmem:[%s2630_s1 + $0x4a0] sm:$0xff]  ;;  %v620_v45 = vld [vmem:[%s2630_s1 + $0x4b8] sm:$0xff] }
  0xc1   :  { %1354 = vmatpush1.bf16.msra.mxu1 %v1353_v54  ;;  %v521_v54 = vld [vmem:[%s2630_s1 + $0x1a0] sm:$0xff]  ;;  %v1493_v18 = vpack.c.bf16 %v617_v17, %v615_v11  ;;  %v619_v23 = vld [vmem:[%s2630_s1 + $0x4b0] sm:$0xff]  ;;  %v624_v24 = vld [vmem:[%s2630_s1 + $0x4d8] sm:$0xff] }
  0xc2   :  { %1356 = vmatprep.subr.bf16.mxu1 %v1355_v55  ;;  %v524_v55 = vld [vmem:[%s2630_s1 + $0x1b8] sm:$0xff]  ;;  %v1397_v56 = vpack.c.bf16 %v521_v54, %v519_v53  ;;  %v621_v16 = vld [vmem:[%s2630_s1 + $0x4c0] sm:$0xff]  ;;  %v623_v53 = vld [vmem:[%s2630_s1 + $0x4d0] sm:$0xff] }
  0xc3   :  { %v1399_v57 = vpack.c.bf16 %v526_v1, %v524_v55  ;;  %v1497_v20 = vpack.c.bf16 %v621_v16, %v619_v23  ;;  %v625_v54 = vld [vmem:[%s2630_s1 + $0x4e0] sm:$0xff]  ;;  %v628_v1 = vld [vmem:[%s2630_s1 + $0x4f8] sm:$0xff]  ;;  %v539_v12 = vld [vmem:[%s2630_s1 + $0x230] sm:$0xff] }
  0xc4   :  { %v1501_v55 = vpack.c.bf16 %v625_v54, %v623_v53  ;;  %v544_v19 = vld [vmem:[%s2630_s1 + $0x258] sm:$0xff]  ;;  %v547_v48 = vld [vmem:[%s2630_s1 + $0x270] sm:$0xff] }
  0xc5   :  { %1358 = vmatpush1.bf16.msra.mxu1 %v1357_v15  ;;  %v525_v15 = vld [vmem:[%s2630_s1 + $0x1c0] sm:$0xff]  ;;  %v551_v30 = vld [vmem:[%s2630_s1 + $0x290] sm:$0xff] }
  0xc6   :  { %1360 = vmatprep.subr.bf16.mxu1 %v1359_v59  ;;  %v528_v59 = vld [vmem:[%s2630_s1 + $0x1d8] sm:$0xff]  ;;  %v1401_v60 = vpack.c.bf16 %v525_v15, %v523_v58  ;;  %v627_v58 = vld [vmem:[%s2630_s1 + $0x4f0] sm:$0xff]  ;;  %v629_v15 = vld [vmem:[%s2630_s1 + $0x500] sm:$0xff] }
  0xc7   :  { %v1403_v61 = vpack.c.bf16 %v530_v13, %v528_v59  ;;  %v1505_v59 = vpack.c.bf16 %v629_v15, %v627_v58  ;;  %v632_v13 = vld [vmem:[%s2630_s1 + $0x518] sm:$0xff]  ;;  %v555_v36 = vld [vmem:[%s2630_s1 + $0x2b0] sm:$0xff] }
  0xc8   :  { %v559_v17 = vld [vmem:[%s2630_s1 + $0x2d0] sm:$0xff] }
  0xc9   :  { %1362 = vmatpush1.bf16.msra.mxu1 %v1361_v7  ;;  %v529_v7 = vld [vmem:[%s2630_s1 + $0x1e0] sm:$0xff]  ;;  %v563_v16 = vld [vmem:[%s2630_s1 + $0x2f0] sm:$0xff] }
  0xca   :  { %1364 = vmatprep.subr.bf16.mxu1 %v1363_v63  ;;  %v532_v63 = vld [vmem:[%s2630_s1 + $0x1f8] sm:$0xff]  ;;  %v1405_v2 = vpack.c.bf16 %v529_v7, %v527_v62  ;;  %v535_v62 = vld [vmem:[%s2630_s1 + $0x210] sm:$0xff]  ;;  %v537_v7 = vld [vmem:[%s2630_s1 + $0x220] sm:$0xff] }
  0xcb   :  { %v567_v54 = vld [vmem:[%s2630_s1 + $0x310] sm:$0xff] }
  0xcd   :  { %1366 = vmatpush1.bf16.msra.mxu1 %v1365_v5  ;;  %v1407_v5 = vpack.c.bf16 %v534_v0, %v532_v63  ;;  %v540_v0 = vld [vmem:[%s2630_s1 + $0x238] sm:$0xff] }
  0xce   :  { %1368 = vmatprep.subr.bf16.mxu1 %v1367_v6  ;;  %v536_v6 = vld [vmem:[%s2630_s1 + $0x218] sm:$0xff] }
  0xcf   :  { %v1411_v42 = vpack.c.bf16 %v538_v14, %v536_v6  ;;  %v541_v14 = vld [vmem:[%s2630_s1 + $0x240] sm:$0xff] }
  0xd1   :  { %1370 = vmatpush1.bf16.msra.mxu1 %v1369_v21  ;;  %v599_v21 = vld [vmem:[%s2630_s1 + $0x410] sm:$0xff] }
  0xd2   :  { %1372 = vmatprep.subr.bf16.mxu1 %v1371_v22  ;;  %v601_v22 = vld [vmem:[%s2630_s1 + $0x420] sm:$0xff] }
  0xd3   :  { %v1477_v25 = vpack.c.bf16 %v601_v22, %v599_v21  ;;  %v546_v21 = vld [vmem:[%s2630_s1 + $0x268] sm:$0xff]  ;;  %v1417_v22 = vpack.c.bf16 %v541_v14, %v539_v12  ;;  %v577_v12 = vld [vmem:[%s2630_s1 + $0x360] sm:$0xff]  ;;  %v580_v14 = vld [vmem:[%s2630_s1 + $0x378] sm:$0xff] }
  0xd5   :  { %1374 = vmatpush1.bf16.msra.mxu1 %v1373_v49  ;;  %1478 = vmatpush1.bf16.msra.mxu0 %v1477_v25  ;;  %v606_v49 = vld [vmem:[%s2630_s1 + $0x448] sm:$0xff]  ;;  %v1419_v25 = vpack.c.bf16 %v546_v21, %v544_v19 }
  0xd6   :  { %1376 = vmatprep.subr.bf16.mxu1 %v1375_v52  ;;  %v1479_v52 = vpack.c.bf16 %v606_v49, %v604_v26  ;;  %v548_v26 = vld [vmem:[%s2630_s1 + $0x278] sm:$0xff]  ;;  %v550_v49 = vld [vmem:[%s2630_s1 + $0x288] sm:$0xff] }
  0xd7   :  { %v1423_v27 = vpack.c.bf16 %v550_v49, %v548_v26  ;;  %v582_v19 = vld [vmem:[%s2630_s1 + $0x388] sm:$0xff] }
  0xd8   :  { %1480 = vmatprep.subr.bf16.mxu0 %v1479_v52  ;;  %v586_v26 = vld [vmem:[%s2630_s1 + $0x3a8] sm:$0xff] }
  0xd9   :  { %1378 = vmatpush1.bf16.msra.mxu1 %v1377_v41  ;;  %1482 = vmatpush1.bf16.msra.mxu0 %v1481_v50  ;;  %v610_v41 = vld [vmem:[%s2630_s1 + $0x468] sm:$0xff]  ;;  %v549_v50 = vld [vmem:[%s2630_s1 + $0x280] sm:$0xff] }
  0xda   :  { %1380 = vmatprep.subr.bf16.mxu1 %v1379_v44  ;;  %v1483_v44 = vpack.c.bf16 %v610_v41, %v608_v28  ;;  %v552_v28 = vld [vmem:[%s2630_s1 + $0x298] sm:$0xff]  ;;  %v554_v41 = vld [vmem:[%s2630_s1 + $0x2a8] sm:$0xff] }
  0xdb   :  { %v1427_v29 = vpack.c.bf16 %v554_v41, %v552_v28  ;;  %v590_v28 = vld [vmem:[%s2630_s1 + $0x3c8] sm:$0xff] }
  0xdc   :  { %1484 = vmatprep.subr.bf16.mxu0 %v1483_v44  ;;  %v1425_v44 = vpack.c.bf16 %v549_v50, %v547_v48  ;;  %v585_v48 = vld [vmem:[%s2630_s1 + $0x3a0] sm:$0xff]  ;;  %v588_v50 = vld [vmem:[%s2630_s1 + $0x3b8] sm:$0xff] }
  0xdd   :  { %1382 = vmatpush1.bf16.msra.mxu1 %v1381_v33  ;;  %1486 = vmatpush1.bf16.msra.mxu0 %v1485_v31  ;;  %v614_v33 = vld [vmem:[%s2630_s1 + $0x488] sm:$0xff]  ;;  %v553_v31 = vld [vmem:[%s2630_s1 + $0x2a0] sm:$0xff] }
  0xde   :  { %1384 = vmatprep.subr.bf16.mxu1 %v1383_v34  ;;  %v1487_v34 = vpack.c.bf16 %v614_v33, %v612_v32  ;;  %v556_v32 = vld [vmem:[%s2630_s1 + $0x2b8] sm:$0xff]  ;;  %v558_v33 = vld [vmem:[%s2630_s1 + $0x2c8] sm:$0xff] }
  0xdf   :  { %v1431_v35 = vpack.c.bf16 %v558_v33, %v556_v32  ;;  %v594_v32 = vld [vmem:[%s2630_s1 + $0x3e8] sm:$0xff] }
  0xe0   :  { %1488 = vmatprep.subr.bf16.mxu0 %v1487_v34  ;;  %v1429_v34 = vpack.c.bf16 %v553_v31, %v551_v30  ;;  %v589_v30 = vld [vmem:[%s2630_s1 + $0x3c0] sm:$0xff]  ;;  %v592_v31 = vld [vmem:[%s2630_s1 + $0x3d8] sm:$0xff] }
  0xe1   :  { %1386 = vmatpush1.bf16.msra.mxu1 %v1385_v39  ;;  %1490 = vmatpush1.bf16.msra.mxu0 %v1489_v37  ;;  %v618_v39 = vld [vmem:[%s2630_s1 + $0x4a8] sm:$0xff]  ;;  %v557_v37 = vld [vmem:[%s2630_s1 + $0x2c0] sm:$0xff] }
  0xe2   :  { %1388 = vmatprep.subr.bf16.mxu1 %v1387_v43  ;;  %v1491_v43 = vpack.c.bf16 %v618_v39, %v616_v38  ;;  %v560_v38 = vld [vmem:[%s2630_s1 + $0x2d8] sm:$0xff]  ;;  %v562_v39 = vld [vmem:[%s2630_s1 + $0x2e8] sm:$0xff] }
  0xe3   :  { %v1435_v11 = vpack.c.bf16 %v562_v39, %v560_v38  ;;  %v598_v38 = vld [vmem:[%s2630_s1 + $0x408] sm:$0xff] }
  0xe4   :  { %1492 = vmatprep.subr.bf16.mxu0 %v1491_v43  ;;  %v1433_v43 = vpack.c.bf16 %v557_v37, %v555_v36  ;;  %v593_v36 = vld [vmem:[%s2630_s1 + $0x3e0] sm:$0xff]  ;;  %v596_v37 = vld [vmem:[%s2630_s1 + $0x3f8] sm:$0xff] }
  0xe5   :  { %1390 = vmatpush1.bf16.msra.mxu1 %v1389_v46  ;;  %1494 = vmatpush1.bf16.msra.mxu0 %v1493_v18  ;;  %v622_v46 = vld [vmem:[%s2630_s1 + $0x4c8] sm:$0xff]  ;;  %v561_v18 = vld [vmem:[%s2630_s1 + $0x2e0] sm:$0xff] }
  0xe6   :  { %1392 = vmatprep.subr.bf16.mxu1 %v1391_v47  ;;  %v1495_v47 = vpack.c.bf16 %v622_v46, %v620_v45  ;;  %v564_v45 = vld [vmem:[%s2630_s1 + $0x2f8] sm:$0xff]  ;;  %v566_v46 = vld [vmem:[%s2630_s1 + $0x308] sm:$0xff] }
  0xe7   :  { %v1439_v23 = vpack.c.bf16 %v566_v46, %v564_v45 }
  0xe8   :  { %1496 = vmatprep.subr.bf16.mxu0 %v1495_v47  ;;  %v1437_v47 = vpack.c.bf16 %v561_v18, %v559_v17  ;;  %v597_v17 = vld [vmem:[%s2630_s1 + $0x400] sm:$0xff] }
  0xe9   :  { %1394 = vmatpush1.bf16.msra.mxu1 %v1393_v51  ;;  %1498 = vmatpush1.bf16.msra.mxu0 %v1497_v20  ;;  %v626_v51 = vld [vmem:[%s2630_s1 + $0x4e8] sm:$0xff]  ;;  %v565_v20 = vld [vmem:[%s2630_s1 + $0x300] sm:$0xff] }
  0xea   :  { %1396 = vmatprep.subr.bf16.mxu1 %v1395_v9  ;;  %v1499_v9 = vpack.c.bf16 %v626_v51, %v624_v24  ;;  %v568_v24 = vld [vmem:[%s2630_s1 + $0x318] sm:$0xff]  ;;  %v570_v51 = vld [vmem:[%s2630_s1 + $0x328] sm:$0xff] }
  0xeb   :  { %v1443_v53 = vpack.c.bf16 %v570_v51, %v568_v24 }
  0xec   :  { %1500 = vmatprep.subr.bf16.mxu0 %v1499_v9  ;;  %v1441_v9 = vpack.c.bf16 %v565_v20, %v563_v16 }
  0xed   :  { %1398 = vmatpush1.bf16.msra.mxu1 %v1397_v56  ;;  %1502 = vmatpush1.bf16.msra.mxu0 %v1501_v55  ;;  %v630_v56 = vld [vmem:[%s2630_s1 + $0x508] sm:$0xff]  ;;  %v569_v55 = vld [vmem:[%s2630_s1 + $0x320] sm:$0xff] }
  0xee   :  { %1400 = vmatprep.subr.bf16.mxu1 %v1399_v57  ;;  %v1503_v57 = vpack.c.bf16 %v630_v56, %v628_v1  ;;  %v572_v1 = vld [vmem:[%s2630_s1 + $0x338] sm:$0xff]  ;;  %v574_v56 = vld [vmem:[%s2630_s1 + $0x348] sm:$0xff]  ;;  %v1445_v15 = vpack.c.bf16 %v569_v55, %v567_v54 }
  0xf0   :  { %1504 = vmatprep.subr.bf16.mxu0 %v1503_v57 }
  0xf1   :  { %1402 = vmatpush1.bf16.msra.mxu1 %v1401_v60  ;;  %1506 = vmatpush1.bf16.msra.mxu0 %v1505_v59  ;;  %v631_v60 = vld [vmem:[%s2630_s1 + $0x510] sm:$0xff] }
  0xf2   :  { %1404 = vmatprep.subr.bf16.mxu1 %v1403_v61  ;;  %811 = vmatprep.subr.mxu0 %v632_v13  ;;  %v2295_v61 = vpop.permute.xlu0 %240 }
  0xf5   :  { %1406 = vmatpush1.bf16.msra.mxu1 %v1405_v2  ;;  %812 = vmatpush1.msra.mxu0 %v631_v60  ;;  %v542_v2 = vld [vmem:[%s2630_s1 + $0x248] sm:$0xff]  ;;  %v1447_v60 = vpack.c.bf16 %v574_v56, %v572_v1 }
  0xf6   :  { %1408 = vmatprep.subr.bf16.mxu1 %v1407_v5  ;;  %v1413_v5 = vpack.c.bf16 %v537_v7, %v535_v62  ;;  %v1415_v10 = vpack.c.bf16 %v542_v2, %v540_v0  ;;  %v571_v62 = vld [vmem:[%s2630_s1 + $0x330] sm:$0xff]  ;;  %v573_v7 = vld [vmem:[%s2630_s1 + $0x340] sm:$0xff]  ;;  %v576_v0 = vld [vmem:[%s2630_s1 + $0x358] sm:$0xff] }
  0xf7   :  { %v578_v2 = vld [vmem:[%s2630_s1 + $0x368] sm:$0xff] }
  0xf9   :  { %1410 = vmatpush1.bf16.msra.mxu1 %v1409_v40  ;;  %v543_v40 = vld [vmem:[%s2630_s1 + $0x250] sm:$0xff] }
  0xfa   :  { %1412 = vmatprep.subr.bf16.mxu1 %v1411_v42  ;;  %v545_v42 = vld [vmem:[%s2630_s1 + $0x260] sm:$0xff] }
  0xfb   :  { %v1421_v52 = vpack.c.bf16 %v545_v42, %v543_v40  ;;  %v581_v40 = vld [vmem:[%s2630_s1 + $0x380] sm:$0xff]  ;;  %v584_v42 = vld [vmem:[%s2630_s1 + $0x398] sm:$0xff] }
 0x16e   :  { %v324_v63 = vpop.f32.mrb[0].mxu0 }
 0x16f   :  { %v326_v3 = vpop.f32.mrb[1].mxu0  ;;  %v325_v6 = vadd.f32 %v324_v63, %v2295_v61 }
 0x170   :  { %v327_v4 = vadd.f32 %v326_v3, %v2295_v61 }
 0x172   :  { %701 = vmatprep.mubr.f32.mxu1 %v327_v4 }
 0x173   :  { %702 = vmatmul.mubr.f32.vlgmr.msra.gmra.mrb[2].mxu1 %v325_v6  ;;  %v1451_v6 = vpack.c.bf16 %v578_v2, %v576_v0  ;;  %v852_v0 = vld [vmem:[%s2630_s1 + $0x530] sm:$0xff] }
 0x174   :  { %1414 = vmatpush1.bf16.msra.mxu1 %v1413_v5  ;;  %v1449_v5 = vpack.c.bf16 %v573_v7, %v571_v62 }
 0x175   :  { %1416 = vmatprep.subr.bf16.mxu1 %v1415_v10  ;;  %v575_v10 = vld [vmem:[%s2630_s1 + $0x350] sm:$0xff] }
 0x176   :  { %v1453_v21 = vpack.c.bf16 %v577_v12, %v575_v10  ;;  %v892_v10 = vlaneseq }
 0x178   :  { %1418 = vmatpush1.bf16.msra.mxu1 %v1417_v22  ;;  %v1455_v22 = vpack.c.bf16 %v582_v19, %v580_v14  ;;  %v893_v12 = vshrl.u32 %v892_v10, 7 }
 0x179   :  { %1420 = vmatprep.subr.bf16.mxu1 %v1419_v25  ;;  %v579_v25 = vld [vmem:[%s2630_s1 + $0x370] sm:$0xff] }
 0x17a   :  { %v1457_v49 = vpack.c.bf16 %v581_v40, %v579_v25  ;;  %v894_v14 = vsub.s32 0, %v893_v12  ;;  %v898_v19 = vsub.s32 1, %v893_v12  ;;  %v1053_v12 = vld [vmem:[%s2630_s1 + $0x590] sm:$0xff] }
 0x17c   :  { %1422 = vmatpush1.bf16.msra.mxu1 %v1421_v52  ;;  %v1459_v52 = vpack.c.bf16 %v586_v26, %v584_v42 }
 0x17d   :  { %1424 = vmatprep.subr.bf16.mxu1 %v1423_v27  ;;  %v583_v27 = vld [vmem:[%s2630_s1 + $0x390] sm:$0xff] }
 0x17e   :  { %v1461_v41 = vpack.c.bf16 %v585_v48, %v583_v27 }
 0x180   :  { %1426 = vmatpush1.bf16.msra.mxu1 %v1425_v44  ;;  %v1463_v44 = vpack.c.bf16 %v590_v28, %v588_v50 }
 0x181   :  { %1428 = vmatprep.subr.bf16.mxu1 %v1427_v29  ;;  %v587_v29 = vld [vmem:[%s2630_s1 + $0x3b0] sm:$0xff] }
 0x182   :  { %v1465_v33 = vpack.c.bf16 %v589_v30, %v587_v29 }
 0x184   :  { %1430 = vmatpush1.bf16.msra.mxu1 %v1429_v34  ;;  %v1467_v34 = vpack.c.bf16 %v594_v32, %v592_v31 }
 0x185   :  { %1432 = vmatprep.subr.bf16.mxu1 %v1431_v35  ;;  %v591_v35 = vld [vmem:[%s2630_s1 + $0x3d0] sm:$0xff] }
 0x186   :  { %v1469_v39 = vpack.c.bf16 %v593_v36, %v591_v35 }
 0x188   :  { %1434 = vmatpush1.bf16.msra.mxu1 %v1433_v43  ;;  %v1471_v43 = vpack.c.bf16 %v598_v38, %v596_v37 }
 0x189   :  { %1436 = vmatprep.subr.bf16.mxu1 %v1435_v11  ;;  %v595_v11 = vld [vmem:[%s2630_s1 + $0x3f0] sm:$0xff] }
 0x18a   :  { %v1473_v18 = vpack.c.bf16 %v597_v17, %v595_v11 }
 0x18c   :  { %1438 = vmatpush1.bf16.msra.mxu1 %v1437_v47 }
 0x18d   :  { %1440 = vmatprep.subr.bf16.mxu1 %v1439_v23 }
 0x18f   :  { %v2407_v57 = vpop.f32.mrb[0].mxu1 }
 0x190   :  { %1442 = vmatpush1.bf16.msra.mxu1 %v1441_v9  ;;  %v397_v58 = vpop.f32.mrb[1].mxu1  ;;  %v396_v45 = vadd.f32 %v2407_v57, %v2295_v61 }
 0x191   :  { %v398_v59 = vadd.f32 %v397_v58, %v2295_v61  ;;  %v466_v13 = vpop.f32.mrb[2].mxu0  ;;  %1444 = vmatprep.subr.bf16.mxu1 %v1443_v53 }
 0x192   :  { %v468_v63 = vpop.f32.mrb[3].mxu0  ;;  %v467_v4 = vadd.f32 %v466_v13, %v2295_v61 }
 0x193   :  { %v469_v3 = vadd.f32 %v468_v63, %v2295_v61  ;;  %772 = vmatprep.mubr.f32.mxu1 %v398_v59  ;;  %v1730_v63 = vmov 1  }
 0x194   :  { %1446 = vmatpush1.bf16.msra.mxu1 %v1445_v15  ;;  %v1729_v15 = vmov 0   ;;  %1674 = vset.pattern.permute.xlu1 %v1730_v63 }
 0x195   :  { %1287 = vmatprep.mubr.msk.f32.mxu0 %vm633_vm10, %v469_v3  ;;  %1448 = vmatprep.subr.bf16.mxu1 %v1447_v60 }
 0x196   :  { %844 = vmatmul.mubr.f32.vlgmr.msra.gmra.mrb[4].mxu0 %v467_v4  ;;  %1673 = vset.pattern.permute.xlu0 %v1729_v15 }
 0x197   :  { %1042 = vmatprep.mubr.f32.mxu0 %v1726_v8 }
 0x198   :  { %1450 = vmatpush1.bf16.msra.mxu1 %v1449_v5 }
 0x199   :  { %1452 = vmatprep.subr.bf16.mxu1 %v1451_v6 }
 0x19c   :  { %1454 = vmatpush1.bf16.msra.mxu1 %v1453_v21  ;;  %v1288_v21 = vld [vmem:[%s2630_s1 + $0x540] ss:$8 sm:$0x3] }
 0x19d   :  { %1456 = vmatprep.subr.bf16.mxu1 %v1455_v22  ;;  %v895_v22 = vrot.slane %v1288_v21, %v894_v14  ;;  %v899_v25 = vrot.slane %v1288_v21, %v898_v19  ;;  %v1054_v14 = vld [vmem:[%s2630_s1 + $0x5a0] sm:$0xff]  ;;  %v1055_v21 = vld [vmem:[%s2630_s1 + $0x5b0] sm:$0xff] }
 0x19e   :  { %v1530_v19 = vpack.c.bf16 %v1054_v14, %v1053_v12  ;;  %v1261_v12 = vld [vmem:[%s2630_s1 + $0x700] sm:$0x3] }
 0x1a0   :  { %1458 = vmatpush1.bf16.msra.mxu1 %v1457_v49 }
 0x1a1   :  { %1460 = vmatprep.subr.bf16.mxu1 %v1459_v52 }
 0x1a4   :  { %1462 = vmatpush1.bf16.msra.mxu1 %v1461_v41  ;;  %v2506_v41 = vld [vmem:[%s2630_s1 + $0x520] sm:$0xff] }
 0x1a5   :  { %1464 = vmatprep.subr.bf16.mxu1 %v1463_v44  ;;  %v1736_v44 = vmov 72  }
 0x1a8   :  { %1466 = vmatpush1.bf16.msra.mxu1 %v1465_v33 }
 0x1a9   :  { %1468 = vmatprep.subr.bf16.mxu1 %v1467_v34 }
 0x1ac   :  { %1470 = vmatpush1.bf16.msra.mxu1 %v1469_v39 }
 0x1ad   :  { %1472 = vmatprep.subr.bf16.mxu1 %v1471_v43 }
 0x1b0   :  { %1474 = vmatpush1.bf16.msra.mxu1 %v1473_v18 }
 0x1b3   :  { %773 = vmatmul.mubr.f32.vlgmr.msra.gmra.mrb[2].mxu1 %v396_v45 }
 0x269   :  { %v845_v46 = vpop.f32.mrb[4].mxu0 }
 0x26a   :  { %v847_v47 = vpop.f32.mrb[5].mxu0 }
 0x286   :  { %v774_v23 = vpop.f32.mrb[2].mxu1 }
 0x287   :  { %v1571_v16 = vadd.f32 %v845_v46, %v774_v23  ;;  %v776_v20 = vpop.f32.mrb[3].mxu1 }
 0x288   :  { %v1572_v24 = vadd.f32 %v847_v47, %v776_v20 }
 0x289   :  { %v850_v51 = vmax.f32 %v1571_v16, 0.0 }
 0x28a   :  { %v851_v9 = vmax.f32 %v1572_v24, 0.0 }
 0x28b   :  { %v861_v1 = vmul.f32 %v850_v51, %v850_v51 }
 0x28c   :  { %v856_v53 = vsel %vm855_vm11, %v851_v9, 0.0  ;;  %v862_v54 = vmul.f32 %v851_v9, %v851_v9 }
 0x28d   :  { %v857_v55 = vadd.f32 %v856_v53, %v850_v51 }
 0x28e   :  { %v863_v56 = vsel %vm855_vm11, %v862_v54, 0.0 }
 0x28f   :  { %858 = vadd.xlane.f32.xlu1 %v857_v55  ;;  %v864_v58 = vadd.f32 %v863_v56, %v861_v1 }
 0x291   :  { %865 = vadd.xlane.f32.xlu0 %v864_v58 }
 0x31c   :  { %v859_v61 = vpop.xlane.xlu1 %858 }
 0x31d   :  { %v860_v57 = vmul.f32 0.0078125, %v859_v61 }
 0x31e   :  { %v866_v59 = vpop.xlane.xlu0 %865 }
 0x31f   :  { %v868_v13 = vmul.f32 %v860_v57, %v860_v57  ;;  %v867_v60 = vmul.f32 0.0078125, %v866_v59 }
 0x321   :  { %v869_v62 = vsub.f32 %v867_v60, %v868_v13 }
 0x323   :  { %v870_v7 = vadd.f32 1e-05, %v869_v62  ;;  %v1049_v62 = vld [vmem:[%s2630_s1 + $0x550] sm:$0xff] }
 0x325   :  { %1717 = vrsqrt.f32 %v870_v7  ;;  %v1050_v7 = vld [vmem:[%s2630_s1 + $0x560] sm:$0xff] }
 0x32f   :  { %v1718_v2 = vpop.eup %1717 }
 0x330   :  { %v872_v3 = vmul.f32 %v1718_v2, %v852_v0  ;;  %v1524_v2 = vpack.c.bf16 %v1050_v7, %v1049_v62  ;;  %v1251_v7 = vld [vmem:[%s2630_s1 + $0x6f0] sm:$0xff] }
 0x332   :  { %875 = vperm.xlu0 %1673, %v872_v3   ;;  %v880_v4 = vmul.f32 %v872_v3, %v860_v57 }
 0x334   :  { %882 = vrot.lane.b32.xlu1 %v880_v4, %s1731_s10  ;;  %v1051_v4 = vld [vmem:[%s2630_s1 + $0x570] sm:$0xff] }
 0x336   :  { %1710 = vset.pattern.permute.xlu0 %v1736_v44  ;;  %v1064_v44 = vld [vmem:[%s2630_s1 + $0x640] sm:$0xff] }
 0x3a6   :  { %v883_v5 = vpop.permute.xlu1 %882 }
 0x3a7   :  { %v885_v6 = vsub.f32 %v852_v0, %v883_v5  ;;  %v1052_v5 = vld [vmem:[%s2630_s1 + $0x580] sm:$0xff] }
 0x3a8   :  { %v1527_v10 = vpack.c.bf16 %v1052_v5, %v1051_v4 }
 0x3a9   :  { %888 = vperm.xlu1 %1674, %v885_v6   ;;  %v1738_v6 = vmov 0.0|0.0  }
 0x3b1   :  { %v876_v40 = vpop.permute.xlu0 %875 }
 0x3b2   :  { %v878_v26 = vmul.f32 %v876_v40, %v850_v51  ;;  %v879_v49 = vmul.f32 %v876_v40, %v851_v9  ;;  %v1057_v40 = vld [vmem:[%s2630_s1 + $0x5d0] sm:$0xff] }
 0x428   :  { %v889_v42 = vpop.permute.xlu1 %888 }
 0x429   :  { %v902_v52 = vmul.f32 %v895_v22, %v889_v42  ;;  %v903_v27 = vmul.f32 %v899_v25, %v889_v42  ;;  %v1056_v22 = vld [vmem:[%s2630_s1 + $0x5c0] sm:$0xff] }
 0x42a   :  { %v1533_v25 = vpack.c.bf16 %v1056_v22, %v1055_v21  ;;  %v1058_v42 = vld [vmem:[%s2630_s1 + $0x5e0] sm:$0xff]  ;;  %v1252_v22 = vld [vmem:[%s2630_s1 + $0x6f0] ss:$0 sm:$0xff] }
 0x42b   :  { %v904_v48 = vadd.f32 %v902_v52, %v878_v26  ;;  %v905_v50 = vadd.f32 %v903_v27, %v879_v49  ;;  %v1536_v26 = vpack.c.bf16 %v1058_v42, %v1057_v40  ;;  %v1059_v49 = vld [vmem:[%s2630_s1 + $0x5f0] sm:$0xff]  ;;  %v1060_v52 = vld [vmem:[%s2630_s1 + $0x600] sm:$0xff] }
 0x42c   :  { %v1539_v27 = vpack.c.bf16 %v1060_v52, %v1059_v49 }
 0x42d   :  { %962 = vrot.lane.b32.xlu0 %v904_v48, %s1732_s13  ;;  %v1675_v28 = vpack.i.bf16 %v905_v50, %v904_v48 }
 0x42f   :  { %1676 = vrot.lane.b32.xlu1 %v1675_v28, %s1720_s14 }
 0x431   :  { %972 = vperm.xlu0 %1710, %v2506_v41  }
 0x433   :  { %1681 = vrot.lane.b32.xlu1 %v1675_v28, %s1721_s15 }
 0x437   :  { %1686 = vrot.lane.b32.xlu1 %v1675_v28, %s1733_s17 }
 0x43b   :  { %1691 = vrot.lane.b32.xlu1 %v1675_v28, %s1734_s18 }
 0x43f   :  { %1696 = vrot.lane.b32.xlu1 %v1675_v28, %s1735_s19 }
 0x443   :  { %1701 = vrot.lane.b32.xlu1 %v1675_v28, %s1722_s16  ;;  %s1742_s16 = smov 115  }
 0x447   :  { %1706 = vrot.lane.b32.xlu1 %v1675_v28, %s1737_s22  ;;  %s1740_s22 = smov 120  }
 0x44b   :  { %964 = vrot.lane.b32.xlu1 %v905_v50, %s1732_s13 }
 0x49f   :  { %v963_v0 = vpop.permute.xlu0 %962 }
 0x4a1   :  { %v1677_v29 = vpop.permute.xlu1 %1676 }
 0x4a2   :  { %v1679_v30 = vunpack.i.h.bf16 %v1677_v29  ;;  %v1678_v31 = vunpack.i.l.bf16 %v1677_v29 }
 0x4a4   :  { %v1507_v32 = vpack.c.bf16 %v1679_v30, %v905_v50  ;;  %v913_v33 = vsel %vm39_vm0, %v1678_v31, %v1679_v30  ;;  %vm966_vm0 = vcmask 867328   ;;  %v1062_v50 = vld [vmem:[%s2630_s1 + $0x620] sm:$0xff]  ;;  %v1065_v30 = vld [vmem:[%s2630_s1 + $0x650] sm:$0xff] }
 0x4a5   :  { %v1509_v34 = vpack.c.bf16 %v913_v33, %v904_v48  ;;  %v1682_v35 = vpop.permute.xlu1 %1681  ;;  %v1061_v48 = vld [vmem:[%s2630_s1 + $0x610] sm:$0xff]  ;;  %v1066_v31 = vld [vmem:[%s2630_s1 + $0x660] sm:$0xff] }
 0x4a6   :  { %1508 = vmatprep.subr.bf16.mxu0 %v1507_v32  ;;  %v1684_v36 = vunpack.i.h.bf16 %v1682_v35  ;;  %v1683_v37 = vunpack.i.l.bf16 %v1682_v35  ;;  %v1542_v28 = vpack.c.bf16 %v1062_v50, %v1061_v48  ;;  %v1548_v32 = vpack.c.bf16 %v1066_v31, %v1065_v30  ;;  %v1067_v33 = vld [vmem:[%s2630_s1 + $0x670] sm:$0xff] }
 0x4a7   :  { %1510 = vmatpush1.bf16.msra.mxu0 %v1509_v34  ;;  %v1068_v34 = vld [vmem:[%s2630_s1 + $0x680] sm:$0xff] }
 0x4a8   :  { %v920_v11 = vsel %vm63_vm2, %v1683_v37, %v1684_v36  ;;  %v1551_v35 = vpack.c.bf16 %v1068_v34, %v1067_v33  ;;  %v1070_v37 = vld [vmem:[%s2630_s1 + $0x6a0] sm:$0xff]  ;;  %vm1741_vm2 = vmmov 0  }
 0x4a9   :  { %v1687_v38 = vpop.permute.xlu1 %1686 }
 0x4aa   :  { %v1689_v39 = vunpack.i.h.bf16 %v1687_v38  ;;  %v1688_v43 = vunpack.i.l.bf16 %v1687_v38 }
 0x4ac   :  { %v928_v17 = vsel %vm927_vm12, %v1688_v43, %v1689_v39  ;;  %v1511_v18 = vpack.c.bf16 %v1689_v39, %v1684_v36  ;;  %v1069_v36 = vld [vmem:[%s2630_s1 + $0x690] sm:$0xff]  ;;  %v1072_v43 = vld [vmem:[%s2630_s1 + $0x6c0] sm:$0xff] }
 0x4ad   :  { %v1513_v45 = vpack.c.bf16 %v928_v17, %v920_v11  ;;  %v1692_v46 = vpop.permute.xlu1 %1691  ;;  %v1554_v38 = vpack.c.bf16 %v1070_v37, %v1069_v36  ;;  %v1071_v39 = vld [vmem:[%s2630_s1 + $0x6b0] sm:$0xff] }
 0x4ae   :  { %1512 = vmatprep.subr.bf16.mxu0 %v1511_v18  ;;  %v1694_v47 = vunpack.i.h.bf16 %v1692_v46  ;;  %v1693_v23 = vunpack.i.l.bf16 %v1692_v46  ;;  %v1557_v11 = vpack.c.bf16 %v1072_v43, %v1071_v39  ;;  %v1073_v17 = vld [vmem:[%s2630_s1 + $0x6d0] sm:$0xff] }
 0x4af   :  { %1514 = vmatpush1.bf16.msra.mxu0 %v1513_v45 }
 0x4b0   :  { %v936_v51 = vsel %vm935_vm13, %v1693_v23, %v1694_v47  ;;  %v973_v18 = vpop.permute.xlu0 %972 }
 0x4b1   :  { %v1697_v16 = vpop.permute.xlu1 %1696 }
 0x4b2   :  { %v1699_v20 = vunpack.i.h.bf16 %v1697_v16  ;;  %v1698_v24 = vunpack.i.l.bf16 %v1697_v16 }
 0x4b4   :  { %v944_v9 = vsel %vm943_vm14, %v1698_v24, %v1699_v20  ;;  %v1515_v53 = vpack.c.bf16 %v1699_v20, %v1694_v47 }
 0x4b5   :  { %v1517_v54 = vpack.c.bf16 %v944_v9, %v936_v51  ;;  %v1702_v55 = vpop.permute.xlu1 %1701  ;;  %v1148_v51 = vld [vmem:[%s2630_s1 + $0x6e0] sm:$0xff] }
 0x4b6   :  { %1516 = vmatprep.subr.bf16.mxu0 %v1515_v53  ;;  %v1704_v1 = vunpack.i.h.bf16 %v1702_v55  ;;  %v1703_v56 = vunpack.i.l.bf16 %v1702_v55 }
 0x4b7   :  { %1518 = vmatpush1.bf16.msra.mxu0 %v1517_v54 }
 0x4b8   :  { %v951_v57 = vsel %vm135_vm4, %v1703_v56, %v1704_v1  ;;  %vm1272_vm4 = vcmask 1024  }
 0x4b9   :  { %v1707_v58 = vpop.permute.xlu1 %1706 }
 0x4ba   :  { %v1709_v15 = vunpack.i.h.bf16 %v1707_v58  ;;  %v1708_v61 = vunpack.i.l.bf16 %v1707_v58 }
 0x4bc   :  { %v959_v59 = vsel %vm958_vm15, %v1708_v61, %v1709_v15  ;;  %v1519_v13 = vpack.c.bf16 %v1709_v15, %v1704_v1 }
 0x4bd   :  { %v1521_v60 = vpack.c.bf16 %v959_v59, %v951_v57  ;;  %v965_v63 = vpop.permute.xlu1 %964 }
 0x4be   :  { %1520 = vmatprep.subr.bf16.mxu0 %v1519_v13  ;;  %v967_v3 = vsel %vm966_vm0, %v963_v0, %v965_v63 }
 0x4bf   :  { %1522 = vmatpush1.bf16.msra.mxu0 %v1521_v60 }
 0x4c0   :  { %994 = vmatprep.subr.mxu0 %v965_v63 }
 0x4c3   :  { %995 = vmatpush1.msra.mxu0 %v967_v3 }
 0x4c4   :  { %1289 = vmatmul.mubr.msk.f32.vlgmr.msra.gmra.mrb[6].mxu0 %vm975_vm1, %v2506_v41  ;;  %1523 = vmatprep.subr.bf16.mxu0 %v1738_v6  ;;  %v1063_v41 = vld [vmem:[%s2630_s1 + $0x630] sm:$0xff] }
 0x4c5   :  { %1525 = vmatpush1.bf16.msra.mxu0 %v1524_v2  ;;  %v1545_v29 = vpack.c.bf16 %v1064_v44, %v1063_v41 }
 0x4c6   :  { %1526 = vmatprep.subr.bf16.mxu0 %v1738_v6 }
 0x4c9   :  { %1528 = vmatpush1.bf16.msra.mxu0 %v1527_v10 }
 0x4ca   :  { %1529 = vmatprep.subr.bf16.mxu0 %v1738_v6 }
 0x4cd   :  { %1531 = vmatpush1.bf16.msra.mxu0 %v1530_v19 }
 0x4ce   :  { %1532 = vmatprep.subr.bf16.mxu0 %v1738_v6 }
 0x4d1   :  { %1534 = vmatpush1.bf16.msra.mxu0 %v1533_v25 }
 0x4d2   :  { %1535 = vmatprep.subr.bf16.mxu0 %v1738_v6 }
 0x4d5   :  { %1537 = vmatpush1.bf16.msra.mxu0 %v1536_v26 }
 0x4d6   :  { %1538 = vmatprep.subr.bf16.mxu0 %v1738_v6 }
 0x4d9   :  { %1540 = vmatpush1.bf16.msra.mxu0 %v1539_v27 }
 0x4da   :  { %1541 = vmatprep.subr.bf16.mxu0 %v1738_v6 }
 0x4dd   :  { %1543 = vmatpush1.bf16.msra.mxu0 %v1542_v28 }
 0x4de   :  { %1544 = vmatprep.subr.bf16.mxu0 %v1738_v6 }
 0x4e1   :  { %1546 = vmatpush1.bf16.msra.mxu0 %v1545_v29 }
 0x4e2   :  { %1547 = vmatprep.subr.bf16.mxu0 %v1738_v6 }
 0x4e5   :  { %1549 = vmatpush1.bf16.msra.mxu0 %v1548_v32 }
 0x4e6   :  { %1550 = vmatprep.subr.bf16.mxu0 %v1738_v6 }
 0x4e9   :  { %1552 = vmatpush1.bf16.msra.mxu0 %v1551_v35 }
 0x4ea   :  { %1553 = vmatprep.subr.bf16.mxu0 %v1738_v6 }
 0x4ed   :  { %1555 = vmatpush1.bf16.msra.mxu0 %v1554_v38 }
 0x4ee   :  { %1556 = vmatprep.subr.bf16.mxu0 %v1738_v6 }
 0x4f1   :  { %1558 = vmatpush1.bf16.msra.mxu0 %v1557_v11 }
 0x4f2   :  { %1125 = vmatprep.subr.mxu0 %v1726_v8 }
 0x4f5   :  { %1126 = vmatpush1.msra.mxu0 %v1073_v17 }
 0x4f6   :  { %1559 = vmatprep.subr.bf16.mxu0 %v1738_v6 }
 0x597   :  { %v1044_v45 = vpop.f32.mrb[6].mxu0 }
 0x598   :  { %v1046_v46 = vpop.f32.mrb[7].mxu0  ;;  %v1045_v23 = vadd.f32 %v1044_v45, %v973_v18 }
 0x599   :  { %v1047_v47 = vadd.f32 %v1046_v46, %v973_v18 }
 0x59b   :  { %1290 = vmatprep.mubr.msk.f32.mxu0 %vm975_vm1, %v1047_v47 }
 0x59c   :  { %1142 = vmatmul.mubr.f32.vlgmr.msra.gmra.mrb[8].mxu0 %v1045_v23 }
 0x59d   :  { %1320 = vmatprep.mubr.msk.f32.mxu0 %vm1741_vm2, %v1726_v8 }
 0x66f   :  { %v1143_v16 = vpop.f32.mrb[8].mxu0 }
 0x670   :  { %v1147_v20 = vmax.f32 %v1143_v16, 0.0  ;;  %v1145_v24 = vpop.f32.mrb[9].mxu0 }
 0x672   :  { %1156 = vrot.lane.b32.xlu0 %v1147_v20, %s1739_s21  ;;  %1150 = vrot.lane.b32.xlu1 %v1147_v20, %s1720_s14 }
 0x676   :  { %1162 = vrot.lane.b32.xlu0 %v1147_v20, %s1740_s22  ;;  %1153 = vrot.lane.b32.xlu1 %v1147_v20, %s1721_s15 }
 0x67a   :  { %1168 = vrot.lane.b32.xlu0 %v1147_v20, %s1742_s16  ;;  %1159 = vrot.lane.b32.xlu1 %v1147_v20, %s1743_s0 }
 0x67e   :  { %1176 = vperm.xlu0 %1710, %v1148_v51   ;;  %1165 = vrot.lane.b32.xlu1 %v1147_v20, %s1735_s19 }
 0x682   :  { %1171 = vrot.lane.b32.xlu1 %v1147_v20, %s1744_s25 }
 0x6e4   :  { %v1157_v9 = vpop.permute.xlu0 %1156  ;;  %v1151_v53 = vpop.permute.xlu1 %1150 }
 0x6e5   :  { %v1560_v54 = vpack.c.bf16 %v1151_v53, %v1147_v20 }
 0x6e7   :  { %1561 = vmatpush3.bf16.msra.mxu0 %v1560_v54 }
 0x6e8   :  { %v1154_v55 = vpop.permute.xlu1 %1153  ;;  %1562 = vmatprep.subr.bf16.mxu0 %v1738_v6  ;;  %v1163_v56 = vpop.permute.xlu0 %1162 }
 0x6e9   :  { %v1563_v1 = vpack.c.bf16 %v1157_v9, %v1154_v55 }
 0x6eb   :  { %1564 = vmatpush3.bf16.msra.mxu0 %v1563_v1 }
 0x6ec   :  { %v1160_v58 = vpop.permute.xlu1 %1159  ;;  %1565 = vmatprep.subr.bf16.mxu0 %v1738_v6  ;;  %v1169_v61 = vpop.permute.xlu0 %1168 }
 0x6ed   :  { %v1566_v15 = vpack.c.bf16 %v1163_v56, %v1160_v58 }
 0x6ef   :  { %1567 = vmatpush3.bf16.msra.mxu0 %v1566_v15 }
 0x6f0   :  { %v1166_v57 = vpop.permute.xlu1 %1165  ;;  %1568 = vmatprep.subr.bf16.mxu0 %v1738_v6 }
 0x6f1   :  { %v1569_v59 = vpack.c.bf16 %v1169_v61, %v1166_v57 }
 0x6f3   :  { %1570 = vmatpush3.bf16.msra.mxu0 %v1569_v59 }
 0x6f4   :  { %1318 = vmatprep.subr.mxu0 %v1726_v8  ;;  %v1172_v13 = vpop.permute.xlu1 %1171 }
 0x6f7   :  { %1319 = vmatpush3.msra.mxu0 %v1172_v13 }
 0x6f8   :  { %1321 = vmatmul.mubr.msk.f32.vlgmr.msra.gmra.mrb[10].mxu0 %vm975_vm1, %v1148_v51 }
 0x6fd   :  { %v1177_v60 = vpop.permute.xlu0 %1176 }
 0x7cb   :  { %v1247_v62 = vpop.f32.mrb[10].mxu0 }
 0x7cc   :  { %v1248_v63 = vadd.f32 %v1247_v62, %v1177_v60  ;;  %v1322_v0 = vpop.f32.mrb[11].mxu0 }
 0x7ce   :  { %v1253_v2 = vmul.f32 %v1251_v7, %v1248_v63 }
 0x7d0   :  { %v1254_v3 = vsel %vm975_vm1, %v1253_v2, 0.0 }
 0x7d1   :  { %v1255_v4 = vrot.slane %v1254_v3, 4 }
 0x7d3   :  { %v1256_v5 = vadd.f32 %v1255_v4, %v1254_v3 }
 0x7d5   :  { %v1257_v6 = vrot.slane %v1256_v5, 2 }
 0x7d7   :  { %v1258_v10 = vadd.f32 %v1257_v6, %v1256_v5 }
 0x7d9   :  { %v1259_v8 = vrot.slane %v1258_v10, 1 }
 0x7db   :  { %v1260_v14 = vadd.f32 %v1259_v8, %v1258_v10 }
 0x7dd   :  { %v1262_v19 = vmul.f32 %v1261_v12, %v1260_v14 }
 0x7df   :  { %v1264_v21 = vsel %vm1263_vm3, %v1262_v19, 0.0 }
 0x7e0   :  { %1265 = vadd.xlane.f32.xlu1 %v1264_v21 }
 0x86d   :  { %v1266_v25 = vpop.xlane.xlu1 %1265 }
 0x86e   :  { %v1267_v40 = vadd.f32 %v1266_v25, %v1252_v22 }
 0x870   :  { %1269 = vrot.lane.b32.xlu0 %v1267_v40, %s1745_s29 }
 0x8e2   :  { %v1270_v42 = vpop.permute.xlu0 %1269 }
 0x8e3   :  { %1273 = vst.msk [vmem:[%s2631_s2] sm:$0x3] %vm1272_vm4, %v1270_v42 }

</bundles_post_ra>
